<compile_context>
chip_gen: v7x
topology: tpu7x:2x2x1
jax: 0.10.0
libtpu: 0.0.40
codegen_flags: <defaults>
</compile_context>

<pallas_src>
import functools

import jax
import jax.numpy as jnp
from jax.experimental import pallas as pl
from jax.experimental.pallas import tpu as pltpu


def _attention_kernel(x_ref, wqkv_ref, wproj_ref, bproj_ref, o_ref, *, num_heads):
    """One batch block per grid step.

    x_ref    : (BB, N, C)   bf16 input tokens
    wqkv_ref : (C, 3C)      bf16 fused qkv weight (scale folded into q cols)
    wproj_ref: (C, C)       bf16 output-projection weight (un-split)
    bproj_ref: (1, C)       f32  output-projection bias
    o_ref    : (BB, N, C)   output tokens
    """
    BB, N, C = x_ref.shape
    H = num_heads
    hd = C // H

    # ---- fused QKV projection: one fat MXU matmul (full 3C output lanes) ----
    x2 = x_ref[...].reshape(BB * N, C)                         # leading-dim reshape
    qkv = jnp.dot(x2, wqkv_ref[...],
                  preferred_element_type=jnp.float32)          # (BB*N, 3C) f32
    qkv = qkv.astype(jnp.bfloat16).reshape(BB, N, 3 * C)       # leading-dim reshape

    # ---- per-head attention (static unroll; bounds score live range) --------
    ctx_heads = []
    for h in range(H):
        lo = h * hd
        q_h = qkv[:, :, 0 * C + lo:0 * C + lo + hd]            # (BB, N, hd) bf16
        k_h = qkv[:, :, 1 * C + lo:1 * C + lo + hd]
        v_h = qkv[:, :, 2 * C + lo:2 * C + lo + hd]

        # Scores (scale already folded into the q weight columns); f32 softmax
        # numerics (v5e has no bf16 VPU/EUP).
        s = jnp.einsum('bnd,bmd->bnm', q_h, k_h,
                       preferred_element_type=jnp.float32)     # (BB, N, N) f32
        s = s - jnp.max(s, axis=-1, keepdims=True)
        p = jnp.exp(s)
        denom = jnp.sum(p, axis=-1, keepdims=True)             # (BB, N, 1) f32
        # attn_drop is p=0.0 -> identity (eval mode).

        ctx = jnp.einsum('bnm,bmd->bnd', p.astype(jnp.bfloat16), v_h,
                         preferred_element_type=jnp.float32)   # (BB, N, hd) f32
        # Flash-style normalization after PV: O(N*hd) instead of O(N*N).
        ctx = ctx * pl.reciprocal(denom, approx=True)
        ctx_heads.append(ctx)

    # ---- merge heads (lane concat) + ONE full-K output projection -----------
    ctx_all = jnp.concatenate(ctx_heads, axis=-1)              # (BB, N, C) f32
    ctx2 = ctx_all.reshape(BB * N, C).astype(jnp.bfloat16)     # lane-dense slab
    out = jnp.dot(ctx2, wproj_ref[...],
                  preferred_element_type=jnp.float32) + bproj_ref[...]
    # proj_drop is p=0.0 -> identity (eval mode).
    o_ref[...] = out.reshape(BB, N, C).astype(o_ref.dtype)


def _prep_weights(wqkv, wproj, bproj, *, num_heads):
    """Host-side (static) weight prep: fold scale into q columns, cast to bf16."""
    C = wproj.shape[0]
    hd = C // num_heads
    scale = hd ** (-0.5)
    wqkv_fused = jnp.concatenate([wqkv[:, :C] * scale, wqkv[:, C:]],
                                 axis=1).astype(jnp.bfloat16)          # (C, 3C)
    return wqkv_fused, wproj.astype(jnp.bfloat16), bproj.astype(jnp.float32).reshape(1, C)


def _live_set_bytes(bb, N, C):
    """Rough per-grid-step live-set estimate (bytes) for batch block `bb`."""
    rows = bb * N
    return (rows * C * 2            # x block (bf16)
            + rows * 3 * C * 6      # fused qkv: f32 accumulation + bf16 copy
            + 2 * bb * N * N * 4    # ONE head's score buffers s / p (f32)
            + rows * C * 10)        # ctx f32 + ctx bf16 + out f32


def _pick_batch_block(B, N, C, *, budget_bytes=40 << 20):
    """Largest divisor of B whose live set fits a v7x-safe budget, while keeping
    the 'parallel' grid axis >= 2 steps when B >= 2 (v7x has 2 TensorCores)."""
    cap = B if B < 2 else B // 2
    for bb in range(cap, 0, -1):
        if B % bb == 0 and _live_set_bytes(bb, N, C) <= budget_bytes:
            return bb
    return 1


def attention_pallas(x, wqkv, wproj, bproj, *, num_heads, batch_block=None,
                     single_buffer_weights=True):
    B, N, C = x.shape
    H = num_heads
    assert C % H == 0

    if batch_block is None:
        batch_block = _pick_batch_block(B, N, C)
    assert B % batch_block == 0, "batch_block must divide B"
    BB = batch_block

    wqkv_f, wproj_bf, bproj_f = _prep_weights(wqkv, wproj, bproj, num_heads=H)
    x_bf = x.astype(jnp.bfloat16)

    # VMEM limit derived from the live-set estimate; capped at 64 MiB so the
    # request is valid on v7x (64 MiB physical) while still letting v5e/v6e
    # (128 MiB physical) use fatter tiles than the conservative defaults.
    weight_bytes = (C * 3 * C + C * C) * 2 + C * 4
    vmem_limit = int(max(32 << 20,
                         min(64 << 20,
                             2 * (_live_set_bytes(BB, N, C) + 2 * weight_bytes))))

    def build_and_run(single_buffer):
        # Constant-index-map weight/bias blocks do not need double buffering.
        wkw = {"pipeline_mode": pl.Buffered(1)} if single_buffer else {}
        grid_spec = pltpu.PrefetchScalarGridSpec(
            num_scalar_prefetch=0,
            grid=(B // BB,),
            in_specs=[
                pl.BlockSpec((BB, N, C), lambda b: (b, 0, 0)),        # x batch block
                pl.BlockSpec((C, 3 * C), lambda b: (0, 0), **wkw),    # fused qkv W
                pl.BlockSpec((C, C), lambda b: (0, 0), **wkw),        # proj W
                pl.BlockSpec((1, C), lambda b: (0, 0), **wkw),        # proj bias
            ],
            out_specs=pl.BlockSpec((BB, N, C), lambda b: (b, 0, 0)),
        )
        return pl.pallas_call(
            functools.partial(_attention_kernel, num_heads=H),
            out_shape=jax.ShapeDtypeStruct((B, N, C), x.dtype),
            grid_spec=grid_spec,
            compiler_params=pltpu.CompilerParams(
                dimension_semantics=("parallel",),
                vmem_limit_bytes=vmem_limit,
            ),
        )(x_bf, wqkv_f, wproj_bf, bproj_f)

    if single_buffer_weights:
        try:
            return jax.block_until_ready(build_and_run(True))
        except Exception:
            # Single-buffering the weight blocks is only a VMEM-footprint
            # optimization; fall back to default double buffering if this
            # JAX/Mosaic build rejects pl.Buffered(1) for pallas_call operands.
            pass
    return build_and_run(False)


def attention_reference(x, wqkv, wproj, bproj, *, num_heads):
    """Pure-JAX f32 reference matching the PyTorch forward exactly."""
    B, N, C = x.shape
    head_dim = C // num_heads
    scale = head_dim ** (-0.5)
    qkv = (x @ wqkv).reshape(B, N, 3, num_heads, head_dim).transpose(2, 0, 3, 1, 4)
    q, k, v = qkv[0], qkv[1], qkv[2]                          # (B, H, N, hd)
    attn = jnp.einsum('bhnd,bhmd->bhnm', q, k) * scale
    attn = jax.nn.softmax(attn, axis=-1)
    out = jnp.einsum('bhnm,bhmd->bhnd', attn, v)
    out = out.transpose(0, 2, 1, 3).reshape(B, N, C)
    return out @ wproj + bproj


if __name__ == "__main__":
    # Small shapes consistent with the module: dim=C=64, num_heads=8 (head_dim=8).
    B, N, C = 2, 8, 64
    num_heads = 8

    key = jax.random.PRNGKey(0)
    kx, kqkv, kproj, kb = jax.random.split(key, 4)

    x = jax.random.normal(kx, (B, N, C), dtype=jnp.float32)
    # Deterministic synthetic parameters (nn.Linear-equivalent, stored as (in, out)).
    wqkv = jax.random.normal(kqkv, (C, 3 * C), dtype=jnp.float32) * (C ** -0.5)
    wproj = jax.random.normal(kproj, (C, C), dtype=jnp.float32) * (C ** -0.5)
    bproj = jax.random.normal(kb, (C,), dtype=jnp.float32) * 0.02

    out = attention_pallas(x, wqkv, wproj, bproj, num_heads=num_heads)
    out = jax.block_until_ready(out)

    ref = attention_reference(x, wqkv, wproj, bproj, num_heads=num_heads)
    assert out.shape == (B, N, C)
    # bf16 MXU operands (f32 accumulation) + approx reciprocal -> loose tolerance.
    assert jnp.allclose(out, ref, atol=5e-2, rtol=5e-2), "mismatch vs reference"

    print("KERNEL_OK")
</pallas_src>

<mosaic_0001>
module attributes {stable_mosaic.version = 11 : i64} {
  func.func @_attention_kernel(%arg0: i32, %arg1: memref<1x8x64xbf16, #tpu.memory_space<vmem>>, %arg2: memref<64x192xbf16, #tpu.memory_space<vmem>>, %arg3: memref<64x64xbf16, #tpu.memory_space<vmem>>, %arg4: memref<1x64xf32, #tpu.memory_space<vmem>>, %arg5: memref<1x8x64xf32, #tpu.memory_space<vmem>>) attributes {dimension_semantics = [#tpu.dimension_semantics<parallel>], iteration_bounds = array<i64: 2>, scalar_prefetch = 0 : i64, scratch_operands = 0 : i64, tpu.core_type = #tpu.core_type<tc>, window_params = [{transform_indices = @transform_0, window_bounds = array<i64: 1, 8, 64>}, {pipeline_mode = #tpu.pipeline_mode<synchronous>, transform_indices = @transform_1, window_bounds = array<i64: 64, 192>}, {pipeline_mode = #tpu.pipeline_mode<synchronous>, transform_indices = @transform_2, window_bounds = array<i64: 64, 64>}, {pipeline_mode = #tpu.pipeline_mode<synchronous>, transform_indices = @transform_3, window_bounds = array<i64: 1, 64>}, {transform_indices = @transform_4, window_bounds = array<i64: 1, 8, 64>}]} {
    %c0 = arith.constant 0 : index
    %c0_0 = arith.constant 0 : index
    %c0_1 = arith.constant 0 : index
    %0 = vector.load %arg1[%c0, %c0_0, %c0_1] : memref<1x8x64xbf16, #tpu.memory_space<vmem>>, vector<1x8x64xbf16>
    %1 = vector.shape_cast %0 : vector<1x8x64xbf16> to vector<8x64xbf16>
    %c0_2 = arith.constant 0 : index
    %c0_3 = arith.constant 0 : index
    %2 = vector.load %arg2[%c0_2, %c0_3] : memref<64x192xbf16, #tpu.memory_space<vmem>>, vector<64x192xbf16>
    %cst = arith.constant dense<0.000000e+00> : vector<8x192xf32>
    %3 = tpu.matmul %1, %2, %cst {dimension_numbers = #tpu.dot_dimension_numbers<[1], [0], [0], [1], [0, 0, 1, 1], [], []>} : vector<8x64xbf16>, vector<64x192xbf16>, vector<8x192xf32> -> vector<8x192xf32>
    %4 = arith.truncf %3 : vector<8x192xf32> to vector<8x192xbf16>
    %5 = vector.shape_cast %4 : vector<8x192xbf16> to vector<1x8x192xbf16>
    %6 = vector.extract_strided_slice %5 {offsets = [0, 0, 0], sizes = [1, 8, 8], strides = [1, 1, 1]} : vector<1x8x192xbf16> to vector<1x8x8xbf16>
    %7 = vector.extract_strided_slice %5 {offsets = [0, 0, 64], sizes = [1, 8, 8], strides = [1, 1, 1]} : vector<1x8x192xbf16> to vector<1x8x8xbf16>
    %8 = vector.extract_strided_slice %5 {offsets = [0, 0, 128], sizes = [1, 8, 8], strides = [1, 1, 1]} : vector<1x8x192xbf16> to vector<1x8x8xbf16>
    "tpu.trace_start"() <{level = 10 : i32, message = "bnd,bmd->bnm"}> : () -> ()
    %cst_4 = arith.constant dense<0.000000e+00> : vector<1x8x8xf32>
    %9 = tpu.matmul %6, %7, %cst_4 {dimension_numbers = #tpu.dot_dimension_numbers<[2], [2], [1], [1], [0, 0, 0, 1, 1, 1], [0], [0]>} : vector<1x8x8xbf16>, vector<1x8x8xbf16>, vector<1x8x8xf32> -> vector<1x8x8xf32>
    "tpu.trace_stop"() : () -> ()
    %cst_5 = arith.constant dense<0xFF800000> : vector<1x8xf32>
    %10 = vector.multi_reduction <maximumf>, %9, %cst_5 [2] : vector<1x8x8xf32> to vector<1x8xf32>
    %11 = vector.shape_cast %10 : vector<1x8xf32> to vector<1x8x1xf32>
    %12 = vector.broadcast %11 : vector<1x8x1xf32> to vector<1x8x8xf32>
    %13 = arith.subf %9, %12 : vector<1x8x8xf32>
    %14 = math.exp %13 : vector<1x8x8xf32>
    %cst_6 = arith.constant dense<0.000000e+00> : vector<1x8xf32>
    %15 = vector.multi_reduction <add>, %14, %cst_6 [2] : vector<1x8x8xf32> to vector<1x8xf32>
    %16 = vector.shape_cast %15 : vector<1x8xf32> to vector<1x8x1xf32>
    %17 = arith.truncf %14 : vector<1x8x8xf32> to vector<1x8x8xbf16>
    "tpu.trace_start"() <{level = 10 : i32, message = "bnm,bmd->bnd"}> : () -> ()
    %cst_7 = arith.constant dense<0.000000e+00> : vector<1x8x8xf32>
    %18 = tpu.matmul %17, %8, %cst_7 {dimension_numbers = #tpu.dot_dimension_numbers<[2], [1], [1], [2], [0, 0, 0, 1, 1, 2], [0], [0]>} : vector<1x8x8xbf16>, vector<1x8x8xbf16>, vector<1x8x8xf32> -> vector<1x8x8xf32>
    "tpu.trace_stop"() : () -> ()
    %19 = tpu.reciprocal %16 {approx = true} : vector<1x8x1xf32> -> vector<1x8x1xf32>
    %20 = vector.broadcast %19 : vector<1x8x1xf32> to vector<1x8x8xf32>
    %21 = arith.mulf %18, %20 : vector<1x8x8xf32>
    %22 = vector.extract_strided_slice %5 {offsets = [0, 0, 8], sizes = [1, 8, 8], strides = [1, 1, 1]} : vector<1x8x192xbf16> to vector<1x8x8xbf16>
    %23 = vector.extract_strided_slice %5 {offsets = [0, 0, 72], sizes = [1, 8, 8], strides = [1, 1, 1]} : vector<1x8x192xbf16> to vector<1x8x8xbf16>
    %24 = vector.extract_strided_slice %5 {offsets = [0, 0, 136], sizes = [1, 8, 8], strides = [1, 1, 1]} : vector<1x8x192xbf16> to vector<1x8x8xbf16>
    "tpu.trace_start"() <{level = 10 : i32, message = "bnd,bmd->bnm"}> : () -> ()
    %cst_8 = arith.constant dense<0.000000e+00> : vector<1x8x8xf32>
    %25 = tpu.matmul %22, %23, %cst_8 {dimension_numbers = #tpu.dot_dimension_numbers<[2], [2], [1], [1], [0, 0, 0, 1, 1, 1], [0], [0]>} : vector<1x8x8xbf16>, vector<1x8x8xbf16>, vector<1x8x8xf32> -> vector<1x8x8xf32>
    "tpu.trace_stop"() : () -> ()
    %cst_9 = arith.constant dense<0xFF800000> : vector<1x8xf32>
    %26 = vector.multi_reduction <maximumf>, %25, %cst_9 [2] : vector<1x8x8xf32> to vector<1x8xf32>
    %27 = vector.shape_cast %26 : vector<1x8xf32> to vector<1x8x1xf32>
    %28 = vector.broadcast %27 : vector<1x8x1xf32> to vector<1x8x8xf32>
    %29 = arith.subf %25, %28 : vector<1x8x8xf32>
    %30 = math.exp %29 : vector<1x8x8xf32>
    %cst_10 = arith.constant dense<0.000000e+00> : vector<1x8xf32>
    %31 = vector.multi_reduction <add>, %30, %cst_10 [2] : vector<1x8x8xf32> to vector<1x8xf32>
    %32 = vector.shape_cast %31 : vector<1x8xf32> to vector<1x8x1xf32>
    %33 = arith.truncf %30 : vector<1x8x8xf32> to vector<1x8x8xbf16>
    "tpu.trace_start"() <{level = 10 : i32, message = "bnm,bmd->bnd"}> : () -> ()
    %cst_11 = arith.constant dense<0.000000e+00> : vector<1x8x8xf32>
    %34 = tpu.matmul %33, %24, %cst_11 {dimension_numbers = #tpu.dot_dimension_numbers<[2], [1], [1], [2], [0, 0, 0, 1, 1, 2], [0], [0]>} : vector<1x8x8xbf16>, vector<1x8x8xbf16>, vector<1x8x8xf32> -> vector<1x8x8xf32>
    "tpu.trace_stop"() : () -> ()
    %35 = tpu.reciprocal %32 {approx = true} : vector<1x8x1xf32> -> vector<1x8x1xf32>
    %36 = vector.broadcast %35 : vector<1x8x1xf32> to vector<1x8x8xf32>
    %37 = arith.mulf %34, %36 : vector<1x8x8xf32>
    %38 = vector.extract_strided_slice %5 {offsets = [0, 0, 16], sizes = [1, 8, 8], strides = [1, 1, 1]} : vector<1x8x192xbf16> to vector<1x8x8xbf16>
    %39 = vector.extract_strided_slice %5 {offsets = [0, 0, 80], sizes = [1, 8, 8], strides = [1, 1, 1]} : vector<1x8x192xbf16> to vector<1x8x8xbf16>
    %40 = vector.extract_strided_slice %5 {offsets = [0, 0, 144], sizes = [1, 8, 8], strides = [1, 1, 1]} : vector<1x8x192xbf16> to vector<1x8x8xbf16>
    "tpu.trace_start"() <{level = 10 : i32, message = "bnd,bmd->bnm"}> : () -> ()
    %cst_12 = arith.constant dense<0.000000e+00> : vector<1x8x8xf32>
    %41 = tpu.matmul %38, %39, %cst_12 {dimension_numbers = #tpu.dot_dimension_numbers<[2], [2], [1], [1], [0, 0, 0, 1, 1, 1], [0], [0]>} : vector<1x8x8xbf16>, vector<1x8x8xbf16>, vector<1x8x8xf32> -> vector<1x8x8xf32>
    "tpu.trace_stop"() : () -> ()
    %cst_13 = arith.constant dense<0xFF800000> : vector<1x8xf32>
    %42 = vector.multi_reduction <maximumf>, %41, %cst_13 [2] : vector<1x8x8xf32> to vector<1x8xf32>
    %43 = vector.shape_cast %42 : vector<1x8xf32> to vector<1x8x1xf32>
    %44 = vector.broadcast %43 : vector<1x8x1xf32> to vector<1x8x8xf32>
    %45 = arith.subf %41, %44 : vector<1x8x8xf32>
    %46 = math.exp %45 : vector<1x8x8xf32>
    %cst_14 = arith.constant dense<0.000000e+00> : vector<1x8xf32>
    %47 = vector.multi_reduction <add>, %46, %cst_14 [2] : vector<1x8x8xf32> to vector<1x8xf32>
    %48 = vector.shape_cast %47 : vector<1x8xf32> to vector<1x8x1xf32>
    %49 = arith.truncf %46 : vector<1x8x8xf32> to vector<1x8x8xbf16>
    "tpu.trace_start"() <{level = 10 : i32, message = "bnm,bmd->bnd"}> : () -> ()
    %cst_15 = arith.constant dense<0.000000e+00> : vector<1x8x8xf32>
    %50 = tpu.matmul %49, %40, %cst_15 {dimension_numbers = #tpu.dot_dimension_numbers<[2], [1], [1], [2], [0, 0, 0, 1, 1, 2], [0], [0]>} : vector<1x8x8xbf16>, vector<1x8x8xbf16>, vector<1x8x8xf32> -> vector<1x8x8xf32>
    "tpu.trace_stop"() : () -> ()
    %51 = tpu.reciprocal %48 {approx = true} : vector<1x8x1xf32> -> vector<1x8x1xf32>
    %52 = vector.broadcast %51 : vector<1x8x1xf32> to vector<1x8x8xf32>
    %53 = arith.mulf %50, %52 : vector<1x8x8xf32>
    %54 = vector.extract_strided_slice %5 {offsets = [0, 0, 24], sizes = [1, 8, 8], strides = [1, 1, 1]} : vector<1x8x192xbf16> to vector<1x8x8xbf16>
    %55 = vector.extract_strided_slice %5 {offsets = [0, 0, 88], sizes = [1, 8, 8], strides = [1, 1, 1]} : vector<1x8x192xbf16> to vector<1x8x8xbf16>
    %56 = vector.extract_strided_slice %5 {offsets = [0, 0, 152], sizes = [1, 8, 8], strides = [1, 1, 1]} : vector<1x8x192xbf16> to vector<1x8x8xbf16>
    "tpu.trace_start"() <{level = 10 : i32, message = "bnd,bmd->bnm"}> : () -> ()
    %cst_16 = arith.constant dense<0.000000e+00> : vector<1x8x8xf32>
    %57 = tpu.matmul %54, %55, %cst_16 {dimension_numbers = #tpu.dot_dimension_numbers<[2], [2], [1], [1], [0, 0, 0, 1, 1, 1], [0], [0]>} : vector<1x8x8xbf16>, vector<1x8x8xbf16>, vector<1x8x8xf32> -> vector<1x8x8xf32>
    "tpu.trace_stop"() : () -> ()
    %cst_17 = arith.constant dense<0xFF800000> : vector<1x8xf32>
    %58 = vector.multi_reduction <maximumf>, %57, %cst_17 [2] : vector<1x8x8xf32> to vector<1x8xf32>
    %59 = vector.shape_cast %58 : vector<1x8xf32> to vector<1x8x1xf32>
    %60 = vector.broadcast %59 : vector<1x8x1xf32> to vector<1x8x8xf32>
    %61 = arith.subf %57, %60 : vector<1x8x8xf32>
    %62 = math.exp %61 : vector<1x8x8xf32>
    %cst_18 = arith.constant dense<0.000000e+00> : vector<1x8xf32>
    %63 = vector.multi_reduction <add>, %62, %cst_18 [2] : vector<1x8x8xf32> to vector<1x8xf32>
    %64 = vector.shape_cast %63 : vector<1x8xf32> to vector<1x8x1xf32>
    %65 = arith.truncf %62 : vector<1x8x8xf32> to vector<1x8x8xbf16>
    "tpu.trace_start"() <{level = 10 : i32, message = "bnm,bmd->bnd"}> : () -> ()
    %cst_19 = arith.constant dense<0.000000e+00> : vector<1x8x8xf32>
    %66 = tpu.matmul %65, %56, %cst_19 {dimension_numbers = #tpu.dot_dimension_numbers<[2], [1], [1], [2], [0, 0, 0, 1, 1, 2], [0], [0]>} : vector<1x8x8xbf16>, vector<1x8x8xbf16>, vector<1x8x8xf32> -> vector<1x8x8xf32>
    "tpu.trace_stop"() : () -> ()
    %67 = tpu.reciprocal %64 {approx = true} : vector<1x8x1xf32> -> vector<1x8x1xf32>
    %68 = vector.broadcast %67 : vector<1x8x1xf32> to vector<1x8x8xf32>
    %69 = arith.mulf %66, %68 : vector<1x8x8xf32>
    %70 = vector.extract_strided_slice %5 {offsets = [0, 0, 32], sizes = [1, 8, 8], strides = [1, 1, 1]} : vector<1x8x192xbf16> to vector<1x8x8xbf16>
    %71 = vector.extract_strided_slice %5 {offsets = [0, 0, 96], sizes = [1, 8, 8], strides = [1, 1, 1]} : vector<1x8x192xbf16> to vector<1x8x8xbf16>
    %72 = vector.extract_strided_slice %5 {offsets = [0, 0, 160], sizes = [1, 8, 8], strides = [1, 1, 1]} : vector<1x8x192xbf16> to vector<1x8x8xbf16>
    "tpu.trace_start"() <{level = 10 : i32, message = "bnd,bmd->bnm"}> : () -> ()
    %cst_20 = arith.constant dense<0.000000e+00> : vector<1x8x8xf32>
    %73 = tpu.matmul %70, %71, %cst_20 {dimension_numbers = #tpu.dot_dimension_numbers<[2], [2], [1], [1], [0, 0, 0, 1, 1, 1], [0], [0]>} : vector<1x8x8xbf16>, vector<1x8x8xbf16>, vector<1x8x8xf32> -> vector<1x8x8xf32>
    "tpu.trace_stop"() : () -> ()
    %cst_21 = arith.constant dense<0xFF800000> : vector<1x8xf32>
    %74 = vector.multi_reduction <maximumf>, %73, %cst_21 [2] : vector<1x8x8xf32> to vector<1x8xf32>
    %75 = vector.shape_cast %74 : vector<1x8xf32> to vector<1x8x1xf32>
    %76 = vector.broadcast %75 : vector<1x8x1xf32> to vector<1x8x8xf32>
    %77 = arith.subf %73, %76 : vector<1x8x8xf32>
    %78 = math.exp %77 : vector<1x8x8xf32>
    %cst_22 = arith.constant dense<0.000000e+00> : vector<1x8xf32>
    %79 = vector.multi_reduction <add>, %78, %cst_22 [2] : vector<1x8x8xf32> to vector<1x8xf32>
    %80 = vector.shape_cast %79 : vector<1x8xf32> to vector<1x8x1xf32>
    %81 = arith.truncf %78 : vector<1x8x8xf32> to vector<1x8x8xbf16>
    "tpu.trace_start"() <{level = 10 : i32, message = "bnm,bmd->bnd"}> : () -> ()
    %cst_23 = arith.constant dense<0.000000e+00> : vector<1x8x8xf32>
    %82 = tpu.matmul %81, %72, %cst_23 {dimension_numbers = #tpu.dot_dimension_numbers<[2], [1], [1], [2], [0, 0, 0, 1, 1, 2], [0], [0]>} : vector<1x8x8xbf16>, vector<1x8x8xbf16>, vector<1x8x8xf32> -> vector<1x8x8xf32>
    "tpu.trace_stop"() : () -> ()
    %83 = tpu.reciprocal %80 {approx = true} : vector<1x8x1xf32> -> vector<1x8x1xf32>
    %84 = vector.broadcast %83 : vector<1x8x1xf32> to vector<1x8x8xf32>
    %85 = arith.mulf %82, %84 : vector<1x8x8xf32>
    %86 = vector.extract_strided_slice %5 {offsets = [0, 0, 40], sizes = [1, 8, 8], strides = [1, 1, 1]} : vector<1x8x192xbf16> to vector<1x8x8xbf16>
    %87 = vector.extract_strided_slice %5 {offsets = [0, 0, 104], sizes = [1, 8, 8], strides = [1, 1, 1]} : vector<1x8x192xbf16> to vector<1x8x8xbf16>
    %88 = vector.extract_strided_slice %5 {offsets = [0, 0, 168], sizes = [1, 8, 8], strides = [1, 1, 1]} : vector<1x8x192xbf16> to vector<1x8x8xbf16>
    "tpu.trace_start"() <{level = 10 : i32, message = "bnd,bmd->bnm"}> : () -> ()
    %cst_24 = arith.constant dense<0.000000e+00> : vector<1x8x8xf32>
    %89 = tpu.matmul %86, %87, %cst_24 {dimension_numbers = #tpu.dot_dimension_numbers<[2], [2], [1], [1], [0, 0, 0, 1, 1, 1], [0], [0]>} : vector<1x8x8xbf16>, vector<1x8x8xbf16>, vector<1x8x8xf32> -> vector<1x8x8xf32>
    "tpu.trace_stop"() : () -> ()
    %cst_25 = arith.constant dense<0xFF800000> : vector<1x8xf32>
    %90 = vector.multi_reduction <maximumf>, %89, %cst_25 [2] : vector<1x8x8xf32> to vector<1x8xf32>
    %91 = vector.shape_cast %90 : vector<1x8xf32> to vector<1x8x1xf32>
    %92 = vector.broadcast %91 : vector<1x8x1xf32> to vector<1x8x8xf32>
    %93 = arith.subf %89, %92 : vector<1x8x8xf32>
    %94 = math.exp %93 : vector<1x8x8xf32>
    %cst_26 = arith.constant dense<0.000000e+00> : vector<1x8xf32>
    %95 = vector.multi_reduction <add>, %94, %cst_26 [2] : vector<1x8x8xf32> to vector<1x8xf32>
    %96 = vector.shape_cast %95 : vector<1x8xf32> to vector<1x8x1xf32>
    %97 = arith.truncf %94 : vector<1x8x8xf32> to vector<1x8x8xbf16>
    "tpu.trace_start"() <{level = 10 : i32, message = "bnm,bmd->bnd"}> : () -> ()
    %cst_27 = arith.constant dense<0.000000e+00> : vector<1x8x8xf32>
    %98 = tpu.matmul %97, %88, %cst_27 {dimension_numbers = #tpu.dot_dimension_numbers<[2], [1], [1], [2], [0, 0, 0, 1, 1, 2], [0], [0]>} : vector<1x8x8xbf16>, vector<1x8x8xbf16>, vector<1x8x8xf32> -> vector<1x8x8xf32>
    "tpu.trace_stop"() : () -> ()
    %99 = tpu.reciprocal %96 {approx = true} : vector<1x8x1xf32> -> vector<1x8x1xf32>
    %100 = vector.broadcast %99 : vector<1x8x1xf32> to vector<1x8x8xf32>
    %101 = arith.mulf %98, %100 : vector<1x8x8xf32>
    %102 = vector.extract_strided_slice %5 {offsets = [0, 0, 48], sizes = [1, 8, 8], strides = [1, 1, 1]} : vector<1x8x192xbf16> to vector<1x8x8xbf16>
    %103 = vector.extract_strided_slice %5 {offsets = [0, 0, 112], sizes = [1, 8, 8], strides = [1, 1, 1]} : vector<1x8x192xbf16> to vector<1x8x8xbf16>
    %104 = vector.extract_strided_slice %5 {offsets = [0, 0, 176], sizes = [1, 8, 8], strides = [1, 1, 1]} : vector<1x8x192xbf16> to vector<1x8x8xbf16>
    "tpu.trace_start"() <{level = 10 : i32, message = "bnd,bmd->bnm"}> : () -> ()
    %cst_28 = arith.constant dense<0.000000e+00> : vector<1x8x8xf32>
    %105 = tpu.matmul %102, %103, %cst_28 {dimension_numbers = #tpu.dot_dimension_numbers<[2], [2], [1], [1], [0, 0, 0, 1, 1, 1], [0], [0]>} : vector<1x8x8xbf16>, vector<1x8x8xbf16>, vector<1x8x8xf32> -> vector<1x8x8xf32>
    "tpu.trace_stop"() : () -> ()
    %cst_29 = arith.constant dense<0xFF800000> : vector<1x8xf32>
    %106 = vector.multi_reduction <maximumf>, %105, %cst_29 [2] : vector<1x8x8xf32> to vector<1x8xf32>
    %107 = vector.shape_cast %106 : vector<1x8xf32> to vector<1x8x1xf32>
    %108 = vector.broadcast %107 : vector<1x8x1xf32> to vector<1x8x8xf32>
    %109 = arith.subf %105, %108 : vector<1x8x8xf32>
    %110 = math.exp %109 : vector<1x8x8xf32>
    %cst_30 = arith.constant dense<0.000000e+00> : vector<1x8xf32>
    %111 = vector.multi_reduction <add>, %110, %cst_30 [2] : vector<1x8x8xf32> to vector<1x8xf32>
    %112 = vector.shape_cast %111 : vector<1x8xf32> to vector<1x8x1xf32>
    %113 = arith.truncf %110 : vector<1x8x8xf32> to vector<1x8x8xbf16>
    "tpu.trace_start"() <{level = 10 : i32, message = "bnm,bmd->bnd"}> : () -> ()
    %cst_31 = arith.constant dense<0.000000e+00> : vector<1x8x8xf32>
    %114 = tpu.matmul %113, %104, %cst_31 {dimension_numbers = #tpu.dot_dimension_numbers<[2], [1], [1], [2], [0, 0, 0, 1, 1, 2], [0], [0]>} : vector<1x8x8xbf16>, vector<1x8x8xbf16>, vector<1x8x8xf32> -> vector<1x8x8xf32>
    "tpu.trace_stop"() : () -> ()
    %115 = tpu.reciprocal %112 {approx = true} : vector<1x8x1xf32> -> vector<1x8x1xf32>
    %116 = vector.broadcast %115 : vector<1x8x1xf32> to vector<1x8x8xf32>
    %117 = arith.mulf %114, %116 : vector<1x8x8xf32>
    %118 = vector.extract_strided_slice %5 {offsets = [0, 0, 56], sizes = [1, 8, 8], strides = [1, 1, 1]} : vector<1x8x192xbf16> to vector<1x8x8xbf16>
    %119 = vector.extract_strided_slice %5 {offsets = [0, 0, 120], sizes = [1, 8, 8], strides = [1, 1, 1]} : vector<1x8x192xbf16> to vector<1x8x8xbf16>
    %120 = vector.extract_strided_slice %5 {offsets = [0, 0, 184], sizes = [1, 8, 8], strides = [1, 1, 1]} : vector<1x8x192xbf16> to vector<1x8x8xbf16>
    "tpu.trace_start"() <{level = 10 : i32, message = "bnd,bmd->bnm"}> : () -> ()
    %cst_32 = arith.constant dense<0.000000e+00> : vector<1x8x8xf32>
    %121 = tpu.matmul %118, %119, %cst_32 {dimension_numbers = #tpu.dot_dimension_numbers<[2], [2], [1], [1], [0, 0, 0, 1, 1, 1], [0], [0]>} : vector<1x8x8xbf16>, vector<1x8x8xbf16>, vector<1x8x8xf32> -> vector<1x8x8xf32>
    "tpu.trace_stop"() : () -> ()
    %cst_33 = arith.constant dense<0xFF800000> : vector<1x8xf32>
    %122 = vector.multi_reduction <maximumf>, %121, %cst_33 [2] : vector<1x8x8xf32> to vector<1x8xf32>
    %123 = vector.shape_cast %122 : vector<1x8xf32> to vector<1x8x1xf32>
    %124 = vector.broadcast %123 : vector<1x8x1xf32> to vector<1x8x8xf32>
    %125 = arith.subf %121, %124 : vector<1x8x8xf32>
    %126 = math.exp %125 : vector<1x8x8xf32>
    %cst_34 = arith.constant dense<0.000000e+00> : vector<1x8xf32>
    %127 = vector.multi_reduction <add>, %126, %cst_34 [2] : vector<1x8x8xf32> to vector<1x8xf32>
    %128 = vector.shape_cast %127 : vector<1x8xf32> to vector<1x8x1xf32>
    %129 = arith.truncf %126 : vector<1x8x8xf32> to vector<1x8x8xbf16>
    "tpu.trace_start"() <{level = 10 : i32, message = "bnm,bmd->bnd"}> : () -> ()
    %cst_35 = arith.constant dense<0.000000e+00> : vector<1x8x8xf32>
    %130 = tpu.matmul %129, %120, %cst_35 {dimension_numbers = #tpu.dot_dimension_numbers<[2], [1], [1], [2], [0, 0, 0, 1, 1, 2], [0], [0]>} : vector<1x8x8xbf16>, vector<1x8x8xbf16>, vector<1x8x8xf32> -> vector<1x8x8xf32>
    "tpu.trace_stop"() : () -> ()
    %131 = tpu.reciprocal %128 {approx = true} : vector<1x8x1xf32> -> vector<1x8x1xf32>
    %132 = vector.broadcast %131 : vector<1x8x1xf32> to vector<1x8x8xf32>
    %133 = arith.mulf %130, %132 : vector<1x8x8xf32>
    %134 = tpu.concatenate %21, %37, %53, %69, %85, %101, %117, %133 in 2 : vector<1x8x8xf32>, vector<1x8x8xf32>, vector<1x8x8xf32>, vector<1x8x8xf32>, vector<1x8x8xf32>, vector<1x8x8xf32>, vector<1x8x8xf32>, vector<1x8x8xf32> -> vector<1x8x64xf32>
    %135 = vector.shape_cast %134 : vector<1x8x64xf32> to vector<8x64xf32>
    %136 = arith.truncf %135 : vector<8x64xf32> to vector<8x64xbf16>
    %c0_36 = arith.constant 0 : index
    %c0_37 = arith.constant 0 : index
    %137 = vector.load %arg3[%c0_36, %c0_37] : memref<64x64xbf16, #tpu.memory_space<vmem>>, vector<64x64xbf16>
    %cst_38 = arith.constant dense<0.000000e+00> : vector<8x64xf32>
    %138 = tpu.matmul %136, %137, %cst_38 {dimension_numbers = #tpu.dot_dimension_numbers<[1], [0], [0], [1], [0, 0, 1, 1], [], []>} : vector<8x64xbf16>, vector<64x64xbf16>, vector<8x64xf32> -> vector<8x64xf32>
    %c0_39 = arith.constant 0 : index
    %c0_40 = arith.constant 0 : index
    %139 = vector.load %arg4[%c0_39, %c0_40] : memref<1x64xf32, #tpu.memory_space<vmem>>, vector<1x64xf32>
    %140 = vector.broadcast %139 : vector<1x64xf32> to vector<8x64xf32>
    %141 = arith.addf %138, %140 : vector<8x64xf32>
    %142 = vector.shape_cast %141 : vector<8x64xf32> to vector<1x8x64xf32>
    %c0_41 = arith.constant 0 : index
    %c0_42 = arith.constant 0 : index
    %c0_43 = arith.constant 0 : index
    %143 = vector.load %arg5[%c0_41, %c0_42, %c0_43] : memref<1x8x64xf32, #tpu.memory_space<vmem>>, vector<1x8x64xf32>
    tpu.vector_store %arg5[%c0_41, %c0_42, %c0_43], %142 {strides = array<i32>} : memref<1x8x64xf32, #tpu.memory_space<vmem>>, vector<1x8x64xf32>,
    return
  }
  func.func @transform_0(%arg0: i32) -> (i32, i32, i32) {
    %c0_i32 = arith.constant 0 : i32
    %c0_i32_0 = arith.constant 0 : i32
    %c0_i32_1 = arith.constant 0 : i32
    return %arg0, %c0_i32, %c0_i32_0 : i32, i32, i32
  }
  func.func @transform_1(%arg0: i32) -> (i32, i32) {
    %c0_i32 = arith.constant 0 : i32
    %c0_i32_0 = arith.constant 0 : i32
    %c0_i32_1 = arith.constant 0 : i32
    return %c0_i32, %c0_i32_0 : i32, i32
  }
  func.func @transform_2(%arg0: i32) -> (i32, i32) {
    %c0_i32 = arith.constant 0 : i32
    %c0_i32_0 = arith.constant 0 : i32
    %c0_i32_1 = arith.constant 0 : i32
    return %c0_i32, %c0_i32_0 : i32, i32
  }
  func.func @transform_3(%arg0: i32) -> (i32, i32) {
    %c0_i32 = arith.constant 0 : i32
    %c0_i32_0 = arith.constant 0 : i32
    %c0_i32_1 = arith.constant 0 : i32
    return %c0_i32, %c0_i32_0 : i32, i32
  }
  func.func @transform_4(%arg0: i32) -> (i32, i32, i32) {
    %c0_i32 = arith.constant 0 : i32
    %c0_i32_0 = arith.constant 0 : i32
    %c0_i32_1 = arith.constant 0 : i32
    return %arg0, %c0_i32, %c0_i32_0 : i32, i32, i32
  }
}

module attributes {stable_mosaic.version = 11 : i64} {
  func.func @_attention_kernel(%arg0: i32, %arg1: memref<1x8x64xbf16, #tpu.memory_space<vmem>>, %arg2: memref<64x192xbf16, #tpu.memory_space<vmem>>, %arg3: memref<64x64xbf16, #tpu.memory_space<vmem>>, %arg4: memref<1x64xf32, #tpu.memory_space<vmem>>, %arg5: memref<1x8x64xf32, #tpu.memory_space<vmem>>) attributes {dimension_semantics = [#tpu.dimension_semantics<parallel>], iteration_bounds = array<i64: 2>, scalar_prefetch = 0 : i64, scratch_operands = 0 : i64, tpu.core_type = #tpu.core_type<tc>, window_params = [{transform_indices = @transform_0, window_bounds = array<i64: 1, 8, 64>}, {pipeline_mode = #tpu.pipeline_mode<synchronous>, transform_indices = @transform_1, window_bounds = array<i64: 64, 192>}, {pipeline_mode = #tpu.pipeline_mode<synchronous>, transform_indices = @transform_2, window_bounds = array<i64: 64, 64>}, {pipeline_mode = #tpu.pipeline_mode<synchronous>, transform_indices = @transform_3, window_bounds = array<i64: 1, 64>}, {transform_indices = @transform_4, window_bounds = array<i64: 1, 8, 64>}]} {
    %c0 = arith.constant 0 : index
    %c0_0 = arith.constant 0 : index
    %c0_1 = arith.constant 0 : index
    %0 = vector.load %arg1[%c0, %c0_0, %c0_1] : memref<1x8x64xbf16, #tpu.memory_space<vmem>>, vector<1x8x64xbf16>
    %1 = vector.shape_cast %0 : vector<1x8x64xbf16> to vector<8x64xbf16>
    %c0_2 = arith.constant 0 : index
    %c0_3 = arith.constant 0 : index
    %2 = vector.load %arg2[%c0_2, %c0_3] : memref<64x192xbf16, #tpu.memory_space<vmem>>, vector<64x192xbf16>
    %cst = arith.constant dense<0.000000e+00> : vector<8x192xf32>
    %3 = tpu.matmul %1, %2, %cst {dimension_numbers = #tpu.dot_dimension_numbers<[1], [0], [0], [1], [0, 0, 1, 1], [], []>} : vector<8x64xbf16>, vector<64x192xbf16>, vector<8x192xf32> -> vector<8x192xf32>
    %4 = arith.truncf %3 : vector<8x192xf32> to vector<8x192xbf16>
    %5 = vector.shape_cast %4 : vector<8x192xbf16> to vector<1x8x192xbf16>
    %6 = vector.extract_strided_slice %5 {offsets = [0, 0, 0], sizes = [1, 8, 8], strides = [1, 1, 1]} : vector<1x8x192xbf16> to vector<1x8x8xbf16>
    %7 = vector.extract_strided_slice %5 {offsets = [0, 0, 64], sizes = [1, 8, 8], strides = [1, 1, 1]} : vector<1x8x192xbf16> to vector<1x8x8xbf16>
    %8 = vector.extract_strided_slice %5 {offsets = [0, 0, 128], sizes = [1, 8, 8], strides = [1, 1, 1]} : vector<1x8x192xbf16> to vector<1x8x8xbf16>
    "tpu.trace_start"() <{level = 10 : i32, message = "bnd,bmd->bnm"}> : () -> ()
    %cst_4 = arith.constant dense<0.000000e+00> : vector<1x8x8xf32>
    %9 = tpu.matmul %6, %7, %cst_4 {dimension_numbers = #tpu.dot_dimension_numbers<[2], [2], [1], [1], [0, 0, 0, 1, 1, 1], [0], [0]>} : vector<1x8x8xbf16>, vector<1x8x8xbf16>, vector<1x8x8xf32> -> vector<1x8x8xf32>
    "tpu.trace_stop"() : () -> ()
    %cst_5 = arith.constant dense<0xFF800000> : vector<1x8xf32>
    %10 = vector.multi_reduction <maximumf>, %9, %cst_5 [2] : vector<1x8x8xf32> to vector<1x8xf32>
    %11 = vector.shape_cast %10 : vector<1x8xf32> to vector<1x8x1xf32>
    %12 = vector.broadcast %11 : vector<1x8x1xf32> to vector<1x8x8xf32>
    %13 = arith.subf %9, %12 : vector<1x8x8xf32>
    %14 = math.exp %13 : vector<1x8x8xf32>
    %cst_6 = arith.constant dense<0.000000e+00> : vector<1x8xf32>
    %15 = vector.multi_reduction <add>, %14, %cst_6 [2] : vector<1x8x8xf32> to vector<1x8xf32>
    %16 = vector.shape_cast %15 : vector<1x8xf32> to vector<1x8x1xf32>
    %17 = arith.truncf %14 : vector<1x8x8xf32> to vector<1x8x8xbf16>
    "tpu.trace_start"() <{level = 10 : i32, message = "bnm,bmd->bnd"}> : () -> ()
    %cst_7 = arith.constant dense<0.000000e+00> : vector<1x8x8xf32>
    %18 = tpu.matmul %17, %8, %cst_7 {dimension_numbers = #tpu.dot_dimension_numbers<[2], [1], [1], [2], [0, 0, 0, 1, 1, 2], [0], [0]>} : vector<1x8x8xbf16>, vector<1x8x8xbf16>, vector<1x8x8xf32> -> vector<1x8x8xf32>
    "tpu.trace_stop"() : () -> ()
    %19 = tpu.reciprocal %16 {approx = true} : vector<1x8x1xf32> -> vector<1x8x1xf32>
    %20 = vector.broadcast %19 : vector<1x8x1xf32> to vector<1x8x8xf32>
    %21 = arith.mulf %18, %20 : vector<1x8x8xf32>
    %22 = vector.extract_strided_slice %5 {offsets = [0, 0, 8], sizes = [1, 8, 8], strides = [1, 1, 1]} : vector<1x8x192xbf16> to vector<1x8x8xbf16>
    %23 = vector.extract_strided_slice %5 {offsets = [0, 0, 72], sizes = [1, 8, 8], strides = [1, 1, 1]} : vector<1x8x192xbf16> to vector<1x8x8xbf16>
    %24 = vector.extract_strided_slice %5 {offsets = [0, 0, 136], sizes = [1, 8, 8], strides = [1, 1, 1]} : vector<1x8x192xbf16> to vector<1x8x8xbf16>
    "tpu.trace_start"() <{level = 10 : i32, message = "bnd,bmd->bnm"}> : () -> ()
    %cst_8 = arith.constant dense<0.000000e+00> : vector<1x8x8xf32>
    %25 = tpu.matmul %22, %23, %cst_8 {dimension_numbers = #tpu.dot_dimension_numbers<[2], [2], [1], [1], [0, 0, 0, 1, 1, 1], [0], [0]>} : vector<1x8x8xbf16>, vector<1x8x8xbf16>, vector<1x8x8xf32> -> vector<1x8x8xf32>
    "tpu.trace_stop"() : () -> ()
    %cst_9 = arith.constant dense<0xFF800000> : vector<1x8xf32>
    %26 = vector.multi_reduction <maximumf>, %25, %cst_9 [2] : vector<1x8x8xf32> to vector<1x8xf32>
    %27 = vector.shape_cast %26 : vector<1x8xf32> to vector<1x8x1xf32>
    %28 = vector.broadcast %27 : vector<1x8x1xf32> to vector<1x8x8xf32>
    %29 = arith.subf %25, %28 : vector<1x8x8xf32>
    %30 = math.exp %29 : vector<1x8x8xf32>
    %cst_10 = arith.constant dense<0.000000e+00> : vector<1x8xf32>
    %31 = vector.multi_reduction <add>, %30, %cst_10 [2] : vector<1x8x8xf32> to vector<1x8xf32>
    %32 = vector.shape_cast %31 : vector<1x8xf32> to vector<1x8x1xf32>
    %33 = arith.truncf %30 : vector<1x8x8xf32> to vector<1x8x8xbf16>
    "tpu.trace_start"() <{level = 10 : i32, message = "bnm,bmd->bnd"}> : () -> ()
    %cst_11 = arith.constant dense<0.000000e+00> : vector<1x8x8xf32>
    %34 = tpu.matmul %33, %24, %cst_11 {dimension_numbers = #tpu.dot_dimension_numbers<[2], [1], [1], [2], [0, 0, 0, 1, 1, 2], [0], [0]>} : vector<1x8x8xbf16>, vector<1x8x8xbf16>, vector<1x8x8xf32> -> vector<1x8x8xf32>
    "tpu.trace_stop"() : () -> ()
    %35 = tpu.reciprocal %32 {approx = true} : vector<1x8x1xf32> -> vector<1x8x1xf32>
    %36 = vector.broadcast %35 : vector<1x8x1xf32> to vector<1x8x8xf32>
    %37 = arith.mulf %34, %36 : vector<1x8x8xf32>
    %38 = vector.extract_strided_slice %5 {offsets = [0, 0, 16], sizes = [1, 8, 8], strides = [1, 1, 1]} : vector<1x8x192xbf16> to vector<1x8x8xbf16>
    %39 = vector.extract_strided_slice %5 {offsets = [0, 0, 80], sizes = [1, 8, 8], strides = [1, 1, 1]} : vector<1x8x192xbf16> to vector<1x8x8xbf16>
    %40 = vector.extract_strided_slice %5 {offsets = [0, 0, 144], sizes = [1, 8, 8], strides = [1, 1, 1]} : vector<1x8x192xbf16> to vector<1x8x8xbf16>
    "tpu.trace_start"() <{level = 10 : i32, message = "bnd,bmd->bnm"}> : () -> ()
    %cst_12 = arith.constant dense<0.000000e+00> : vector<1x8x8xf32>
    %41 = tpu.matmul %38, %39, %cst_12 {dimension_numbers = #tpu.dot_dimension_numbers<[2], [2], [1], [1], [0, 0, 0, 1, 1, 1], [0], [0]>} : vector<1x8x8xbf16>, vector<1x8x8xbf16>, vector<1x8x8xf32> -> vector<1x8x8xf32>
    "tpu.trace_stop"() : () -> ()
    %cst_13 = arith.constant dense<0xFF800000> : vector<1x8xf32>
    %42 = vector.multi_reduction <maximumf>, %41, %cst_13 [2] : vector<1x8x8xf32> to vector<1x8xf32>
    %43 = vector.shape_cast %42 : vector<1x8xf32> to vector<1x8x1xf32>
    %44 = vector.broadcast %43 : vector<1x8x1xf32> to vector<1x8x8xf32>
    %45 = arith.subf %41, %44 : vector<1x8x8xf32>
    %46 = math.exp %45 : vector<1x8x8xf32>
    %cst_14 = arith.constant dense<0.000000e+00> : vector<1x8xf32>
    %47 = vector.multi_reduction <add>, %46, %cst_14 [2] : vector<1x8x8xf32> to vector<1x8xf32>
    %48 = vector.shape_cast %47 : vector<1x8xf32> to vector<1x8x1xf32>
    %49 = arith.truncf %46 : vector<1x8x8xf32> to vector<1x8x8xbf16>
    "tpu.trace_start"() <{level = 10 : i32, message = "bnm,bmd->bnd"}> : () -> ()
    %cst_15 = arith.constant dense<0.000000e+00> : vector<1x8x8xf32>
    %50 = tpu.matmul %49, %40, %cst_15 {dimension_numbers = #tpu.dot_dimension_numbers<[2], [1], [1], [2], [0, 0, 0, 1, 1, 2], [0], [0]>} : vector<1x8x8xbf16>, vector<1x8x8xbf16>, vector<1x8x8xf32> -> vector<1x8x8xf32>
    "tpu.trace_stop"() : () -> ()
    %51 = tpu.reciprocal %48 {approx = true} : vector<1x8x1xf32> -> vector<1x8x1xf32>
    %52 = vector.broadcast %51 : vector<1x8x1xf32> to vector<1x8x8xf32>
    %53 = arith.mulf %50, %52 : vector<1x8x8xf32>
    %54 = vector.extract_strided_slice %5 {offsets = [0, 0, 24], sizes = [1, 8, 8], strides = [1, 1, 1]} : vector<1x8x192xbf16> to vector<1x8x8xbf16>
    %55 = vector.extract_strided_slice %5 {offsets = [0, 0, 88], sizes = [1, 8, 8], strides = [1, 1, 1]} : vector<1x8x192xbf16> to vector<1x8x8xbf16>
    %56 = vector.extract_strided_slice %5 {offsets = [0, 0, 152], sizes = [1, 8, 8], strides = [1, 1, 1]} : vector<1x8x192xbf16> to vector<1x8x8xbf16>
    "tpu.trace_start"() <{level = 10 : i32, message = "bnd,bmd->bnm"}> : () -> ()
    %cst_16 = arith.constant dense<0.000000e+00> : vector<1x8x8xf32>
    %57 = tpu.matmul %54, %55, %cst_16 {dimension_numbers = #tpu.dot_dimension_numbers<[2], [2], [1], [1], [0, 0, 0, 1, 1, 1], [0], [0]>} : vector<1x8x8xbf16>, vector<1x8x8xbf16>, vector<1x8x8xf32> -> vector<1x8x8xf32>
    "tpu.trace_stop"() : () -> ()
    %cst_17 = arith.constant dense<0xFF800000> : vector<1x8xf32>
    %58 = vector.multi_reduction <maximumf>, %57, %cst_17 [2] : vector<1x8x8xf32> to vector<1x8xf32>
    %59 = vector.shape_cast %58 : vector<1x8xf32> to vector<1x8x1xf32>
    %60 = vector.broadcast %59 : vector<1x8x1xf32> to vector<1x8x8xf32>
    %61 = arith.subf %57, %60 : vector<1x8x8xf32>
    %62 = math.exp %61 : vector<1x8x8xf32>
    %cst_18 = arith.constant dense<0.000000e+00> : vector<1x8xf32>
    %63 = vector.multi_reduction <add>, %62, %cst_18 [2] : vector<1x8x8xf32> to vector<1x8xf32>
    %64 = vector.shape_cast %63 : vector<1x8xf32> to vector<1x8x1xf32>
    %65 = arith.truncf %62 : vector<1x8x8xf32> to vector<1x8x8xbf16>
    "tpu.trace_start"() <{level = 10 : i32, message = "bnm,bmd->bnd"}> : () -> ()
    %cst_19 = arith.constant dense<0.000000e+00> : vector<1x8x8xf32>
    %66 = tpu.matmul %65, %56, %cst_19 {dimension_numbers = #tpu.dot_dimension_numbers<[2], [1], [1], [2], [0, 0, 0, 1, 1, 2], [0], [0]>} : vector<1x8x8xbf16>, vector<1x8x8xbf16>, vector<1x8x8xf32> -> vector<1x8x8xf32>
    "tpu.trace_stop"() : () -> ()
    %67 = tpu.reciprocal %64 {approx = true} : vector<1x8x1xf32> -> vector<1x8x1xf32>
    %68 = vector.broadcast %67 : vector<1x8x1xf32> to vector<1x8x8xf32>
    %69 = arith.mulf %66, %68 : vector<1x8x8xf32>
    %70 = vector.extract_strided_slice %5 {offsets = [0, 0, 32], sizes = [1, 8, 8], strides = [1, 1, 1]} : vector<1x8x192xbf16> to vector<1x8x8xbf16>
    %71 = vector.extract_strided_slice %5 {offsets = [0, 0, 96], sizes = [1, 8, 8], strides = [1, 1, 1]} : vector<1x8x192xbf16> to vector<1x8x8xbf16>
    %72 = vector.extract_strided_slice %5 {offsets = [0, 0, 160], sizes = [1, 8, 8], strides = [1, 1, 1]} : vector<1x8x192xbf16> to vector<1x8x8xbf16>
    "tpu.trace_start"() <{level = 10 : i32, message = "bnd,bmd->bnm"}> : () -> ()
    %cst_20 = arith.constant dense<0.000000e+00> : vector<1x8x8xf32>
    %73 = tpu.matmul %70, %71, %cst_20 {dimension_numbers = #tpu.dot_dimension_numbers<[2], [2], [1], [1], [0, 0, 0, 1, 1, 1], [0], [0]>} : vector<1x8x8xbf16>, vector<1x8x8xbf16>, vector<1x8x8xf32> -> vector<1x8x8xf32>
    "tpu.trace_stop"() : () -> ()
    %cst_21 = arith.constant dense<0xFF800000> : vector<1x8xf32>
    %74 = vector.multi_reduction <maximumf>, %73, %cst_21 [2] : vector<1x8x8xf32> to vector<1x8xf32>
    %75 = vector.shape_cast %74 : vector<1x8xf32> to vector<1x8x1xf32>
    %76 = vector.broadcast %75 : vector<1x8x1xf32> to vector<1x8x8xf32>
    %77 = arith.subf %73, %76 : vector<1x8x8xf32>
    %78 = math.exp %77 : vector<1x8x8xf32>
    %cst_22 = arith.constant dense<0.000000e+00> : vector<1x8xf32>
    %79 = vector.multi_reduction <add>, %78, %cst_22 [2] : vector<1x8x8xf32> to vector<1x8xf32>
    %80 = vector.shape_cast %79 : vector<1x8xf32> to vector<1x8x1xf32>
    %81 = arith.truncf %78 : vector<1x8x8xf32> to vector<1x8x8xbf16>
    "tpu.trace_start"() <{level = 10 : i32, message = "bnm,bmd->bnd"}> : () -> ()
    %cst_23 = arith.constant dense<0.000000e+00> : vector<1x8x8xf32>
    %82 = tpu.matmul %81, %72, %cst_23 {dimension_numbers = #tpu.dot_dimension_numbers<[2], [1], [1], [2], [0, 0, 0, 1, 1, 2], [0], [0]>} : vector<1x8x8xbf16>, vector<1x8x8xbf16>, vector<1x8x8xf32> -> vector<1x8x8xf32>
    "tpu.trace_stop"() : () -> ()
    %83 = tpu.reciprocal %80 {approx = true} : vector<1x8x1xf32> -> vector<1x8x1xf32>
    %84 = vector.broadcast %83 : vector<1x8x1xf32> to vector<1x8x8xf32>
    %85 = arith.mulf %82, %84 : vector<1x8x8xf32>
    %86 = vector.extract_strided_slice %5 {offsets = [0, 0, 40], sizes = [1, 8, 8], strides = [1, 1, 1]} : vector<1x8x192xbf16> to vector<1x8x8xbf16>
    %87 = vector.extract_strided_slice %5 {offsets = [0, 0, 104], sizes = [1, 8, 8], strides = [1, 1, 1]} : vector<1x8x192xbf16> to vector<1x8x8xbf16>
    %88 = vector.extract_strided_slice %5 {offsets = [0, 0, 168], sizes = [1, 8, 8], strides = [1, 1, 1]} : vector<1x8x192xbf16> to vector<1x8x8xbf16>
    "tpu.trace_start"() <{level = 10 : i32, message = "bnd,bmd->bnm"}> : () -> ()
    %cst_24 = arith.constant dense<0.000000e+00> : vector<1x8x8xf32>
    %89 = tpu.matmul %86, %87, %cst_24 {dimension_numbers = #tpu.dot_dimension_numbers<[2], [2], [1], [1], [0, 0, 0, 1, 1, 1], [0], [0]>} : vector<1x8x8xbf16>, vector<1x8x8xbf16>, vector<1x8x8xf32> -> vector<1x8x8xf32>
    "tpu.trace_stop"() : () -> ()
    %cst_25 = arith.constant dense<0xFF800000> : vector<1x8xf32>
    %90 = vector.multi_reduction <maximumf>, %89, %cst_25 [2] : vector<1x8x8xf32> to vector<1x8xf32>
    %91 = vector.shape_cast %90 : vector<1x8xf32> to vector<1x8x1xf32>
    %92 = vector.broadcast %91 : vector<1x8x1xf32> to vector<1x8x8xf32>
    %93 = arith.subf %89, %92 : vector<1x8x8xf32>
    %94 = math.exp %93 : vector<1x8x8xf32>
    %cst_26 = arith.constant dense<0.000000e+00> : vector<1x8xf32>
    %95 = vector.multi_reduction <add>, %94, %cst_26 [2] : vector<1x8x8xf32> to vector<1x8xf32>
    %96 = vector.shape_cast %95 : vector<1x8xf32> to vector<1x8x1xf32>
    %97 = arith.truncf %94 : vector<1x8x8xf32> to vector<1x8x8xbf16>
    "tpu.trace_start"() <{level = 10 : i32, message = "bnm,bmd->bnd"}> : () -> ()
    %cst_27 = arith.constant dense<0.000000e+00> : vector<1x8x8xf32>
    %98 = tpu.matmul %97, %88, %cst_27 {dimension_numbers = #tpu.dot_dimension_numbers<[2], [1], [1], [2], [0, 0, 0, 1, 1, 2], [0], [0]>} : vector<1x8x8xbf16>, vector<1x8x8xbf16>, vector<1x8x8xf32> -> vector<1x8x8xf32>
    "tpu.trace_stop"() : () -> ()
    %99 = tpu.reciprocal %96 {approx = true} : vector<1x8x1xf32> -> vector<1x8x1xf32>
    %100 = vector.broadcast %99 : vector<1x8x1xf32> to vector<1x8x8xf32>
    %101 = arith.mulf %98, %100 : vector<1x8x8xf32>
    %102 = vector.extract_strided_slice %5 {offsets = [0, 0, 48], sizes = [1, 8, 8], strides = [1, 1, 1]} : vector<1x8x192xbf16> to vector<1x8x8xbf16>
    %103 = vector.extract_strided_slice %5 {offsets = [0, 0, 112], sizes = [1, 8, 8], strides = [1, 1, 1]} : vector<1x8x192xbf16> to vector<1x8x8xbf16>
    %104 = vector.extract_strided_slice %5 {offsets = [0, 0, 176], sizes = [1, 8, 8], strides = [1, 1, 1]} : vector<1x8x192xbf16> to vector<1x8x8xbf16>
    "tpu.trace_start"() <{level = 10 : i32, message = "bnd,bmd->bnm"}> : () -> ()
    %cst_28 = arith.constant dense<0.000000e+00> : vector<1x8x8xf32>
    %105 = tpu.matmul %102, %103, %cst_28 {dimension_numbers = #tpu.dot_dimension_numbers<[2], [2], [1], [1], [0, 0, 0, 1, 1, 1], [0], [0]>} : vector<1x8x8xbf16>, vector<1x8x8xbf16>, vector<1x8x8xf32> -> vector<1x8x8xf32>
    "tpu.trace_stop"() : () -> ()
    %cst_29 = arith.constant dense<0xFF800000> : vector<1x8xf32>
    %106 = vector.multi_reduction <maximumf>, %105, %cst_29 [2] : vector<1x8x8xf32> to vector<1x8xf32>
    %107 = vector.shape_cast %106 : vector<1x8xf32> to vector<1x8x1xf32>
    %108 = vector.broadcast %107 : vector<1x8x1xf32> to vector<1x8x8xf32>
    %109 = arith.subf %105, %108 : vector<1x8x8xf32>
    %110 = math.exp %109 : vector<1x8x8xf32>
    %cst_30 = arith.constant dense<0.000000e+00> : vector<1x8xf32>
    %111 = vector.multi_reduction <add>, %110, %cst_30 [2] : vector<1x8x8xf32> to vector<1x8xf32>
    %112 = vector.shape_cast %111 : vector<1x8xf32> to vector<1x8x1xf32>
    %113 = arith.truncf %110 : vector<1x8x8xf32> to vector<1x8x8xbf16>
    "tpu.trace_start"() <{level = 10 : i32, message = "bnm,bmd->bnd"}> : () -> ()
    %cst_31 = arith.constant dense<0.000000e+00> : vector<1x8x8xf32>
    %114 = tpu.matmul %113, %104, %cst_31 {dimension_numbers = #tpu.dot_dimension_numbers<[2], [1], [1], [2], [0, 0, 0, 1, 1, 2], [0], [0]>} : vector<1x8x8xbf16>, vector<1x8x8xbf16>, vector<1x8x8xf32> -> vector<1x8x8xf32>
    "tpu.trace_stop"() : () -> ()
    %115 = tpu.reciprocal %112 {approx = true} : vector<1x8x1xf32> -> vector<1x8x1xf32>
    %116 = vector.broadcast %115 : vector<1x8x1xf32> to vector<1x8x8xf32>
    %117 = arith.mulf %114, %116 : vector<1x8x8xf32>
    %118 = vector.extract_strided_slice %5 {offsets = [0, 0, 56], sizes = [1, 8, 8], strides = [1, 1, 1]} : vector<1x8x192xbf16> to vector<1x8x8xbf16>
    %119 = vector.extract_strided_slice %5 {offsets = [0, 0, 120], sizes = [1, 8, 8], strides = [1, 1, 1]} : vector<1x8x192xbf16> to vector<1x8x8xbf16>
    %120 = vector.extract_strided_slice %5 {offsets = [0, 0, 184], sizes = [1, 8, 8], strides = [1, 1, 1]} : vector<1x8x192xbf16> to vector<1x8x8xbf16>
    "tpu.trace_start"() <{level = 10 : i32, message = "bnd,bmd->bnm"}> : () -> ()
    %cst_32 = arith.constant dense<0.000000e+00> : vector<1x8x8xf32>
    %121 = tpu.matmul %118, %119, %cst_32 {dimension_numbers = #tpu.dot_dimension_numbers<[2], [2], [1], [1], [0, 0, 0, 1, 1, 1], [0], [0]>} : vector<1x8x8xbf16>, vector<1x8x8xbf16>, vector<1x8x8xf32> -> vector<1x8x8xf32>
    "tpu.trace_stop"() : () -> ()
    %cst_33 = arith.constant dense<0xFF800000> : vector<1x8xf32>
    %122 = vector.multi_reduction <maximumf>, %121, %cst_33 [2] : vector<1x8x8xf32> to vector<1x8xf32>
    %123 = vector.shape_cast %122 : vector<1x8xf32> to vector<1x8x1xf32>
    %124 = vector.broadcast %123 : vector<1x8x1xf32> to vector<1x8x8xf32>
    %125 = arith.subf %121, %124 : vector<1x8x8xf32>
    %126 = math.exp %125 : vector<1x8x8xf32>
    %cst_34 = arith.constant dense<0.000000e+00> : vector<1x8xf32>
    %127 = vector.multi_reduction <add>, %126, %cst_34 [2] : vector<1x8x8xf32> to vector<1x8xf32>
    %128 = vector.shape_cast %127 : vector<1x8xf32> to vector<1x8x1xf32>
    %129 = arith.truncf %126 : vector<1x8x8xf32> to vector<1x8x8xbf16>
    "tpu.trace_start"() <{level = 10 : i32, message = "bnm,bmd->bnd"}> : () -> ()
    %cst_35 = arith.constant dense<0.000000e+00> : vector<1x8x8xf32>
    %130 = tpu.matmul %129, %120, %cst_35 {dimension_numbers = #tpu.dot_dimension_numbers<[2], [1], [1], [2], [0, 0, 0, 1, 1, 2], [0], [0]>} : vector<1x8x8xbf16>, vector<1x8x8xbf16>, vector<1x8x8xf32> -> vector<1x8x8xf32>
    "tpu.trace_stop"() : () -> ()
    %131 = tpu.reciprocal %128 {approx = true} : vector<1x8x1xf32> -> vector<1x8x1xf32>
    %132 = vector.broadcast %131 : vector<1x8x1xf32> to vector<1x8x8xf32>
    %133 = arith.mulf %130, %132 : vector<1x8x8xf32>
    %134 = tpu.concatenate %21, %37, %53, %69, %85, %101, %117, %133 in 2 : vector<1x8x8xf32>, vector<1x8x8xf32>, vector<1x8x8xf32>, vector<1x8x8xf32>, vector<1x8x8xf32>, vector<1x8x8xf32>, vector<1x8x8xf32>, vector<1x8x8xf32> -> vector<1x8x64xf32>
    %135 = vector.shape_cast %134 : vector<1x8x64xf32> to vector<8x64xf32>
    %136 = arith.truncf %135 : vector<8x64xf32> to vector<8x64xbf16>
    %c0_36 = arith.constant 0 : index
    %c0_37 = arith.constant 0 : index
    %137 = vector.load %arg3[%c0_36, %c0_37] : memref<64x64xbf16, #tpu.memory_space<vmem>>, vector<64x64xbf16>
    %cst_38 = arith.constant dense<0.000000e+00> : vector<8x64xf32>
    %138 = tpu.matmul %136, %137, %cst_38 {dimension_numbers = #tpu.dot_dimension_numbers<[1], [0], [0], [1], [0, 0, 1, 1], [], []>} : vector<8x64xbf16>, vector<64x64xbf16>, vector<8x64xf32> -> vector<8x64xf32>
    %c0_39 = arith.constant 0 : index
    %c0_40 = arith.constant 0 : index
    %139 = vector.load %arg4[%c0_39, %c0_40] : memref<1x64xf32, #tpu.memory_space<vmem>>, vector<1x64xf32>
    %140 = vector.broadcast %139 : vector<1x64xf32> to vector<8x64xf32>
    %141 = arith.addf %138, %140 : vector<8x64xf32>
    %142 = vector.shape_cast %141 : vector<8x64xf32> to vector<1x8x64xf32>
    %c0_41 = arith.constant 0 : index
    %c0_42 = arith.constant 0 : index
    %c0_43 = arith.constant 0 : index
    %143 = vector.load %arg5[%c0_41, %c0_42, %c0_43] : memref<1x8x64xf32, #tpu.memory_space<vmem>>, vector<1x8x64xf32>
    tpu.vector_store %arg5[%c0_41, %c0_42, %c0_43], %142 {strides = array<i32>} : memref<1x8x64xf32, #tpu.memory_space<vmem>>, vector<1x8x64xf32>,
    return
  }
  func.func @transform_0(%arg0: i32) -> (i32, i32, i32) {
    %c0_i32 = arith.constant 0 : i32
    %c0_i32_0 = arith.constant 0 : i32
    %c0_i32_1 = arith.constant 0 : i32
    return %arg0, %c0_i32, %c0_i32_0 : i32, i32, i32
  }
  func.func @transform_1(%arg0: i32) -> (i32, i32) {
    %c0_i32 = arith.constant 0 : i32
    %c0_i32_0 = arith.constant 0 : i32
    %c0_i32_1 = arith.constant 0 : i32
    return %c0_i32, %c0_i32_0 : i32, i32
  }
  func.func @transform_2(%arg0: i32) -> (i32, i32) {
    %c0_i32 = arith.constant 0 : i32
    %c0_i32_0 = arith.constant 0 : i32
    %c0_i32_1 = arith.constant 0 : i32
    return %c0_i32, %c0_i32_0 : i32, i32
  }
  func.func @transform_3(%arg0: i32) -> (i32, i32) {
    %c0_i32 = arith.constant 0 : i32
    %c0_i32_0 = arith.constant 0 : i32
    %c0_i32_1 = arith.constant 0 : i32
    return %c0_i32, %c0_i32_0 : i32, i32
  }
  func.func @transform_4(%arg0: i32) -> (i32, i32, i32) {
    %c0_i32 = arith.constant 0 : i32
    %c0_i32_0 = arith.constant 0 : i32
    %c0_i32_1 = arith.constant 0 : i32
    return %arg0, %c0_i32, %c0_i32_0 : i32, i32, i32
  }
}

</mosaic_0001>

<bundles_post_ra>
// kernel: tpu_custom_call.1
= control target key start
LH: loop header
LB: loop body
LE: loop exit
PB: predicated region body
PF: predicated region fallthrough
CT: control target
= control target key end

     0   :  { %9 = vsyncpa [#allocation3], 0  ;;  %s2410_s0 = inlined_call_operand.hbm [shape: bf16[2,8,64], index: 0, kind: input, shape index: {}]   ;;  %s2411_s1 = inlined_call_operand.hbm [shape: bf16[64,192], index: 1, kind: input, shape index: {}]   ;;  %s2412_s2 = inlined_call_operand.hbm [shape: bf16[64,64], index: 2, kind: input, shape index: {}]   ;;  %s2413_s3 = inlined_call_operand.vmem [shape: f32[1,64], index: 3, kind: input, shape index: {}]   ;;  %s2414_s4 = inlined_call_operand.hbm [shape: f32[2,8,64], index: 4, kind: output, shape index: {}]  }
   0x1   :  { %11 = vsyncpa [#allocation3 + $0x1], 0 }
   0x2   :  { %12 = vsyncpa [#allocation6], 0 }
   0x3   :  { %13 = vsyncpa [#allocation4], 0 }
   0x4   :  { %15 = vsyncpa [#allocation4 + $0x1], 0  ;;  %s1985_s15 = smov 0   ;;  %s1987_s16 = smov 0  }
   0x5   :  { %s1989_s17 = smov 0   ;;  %s1991_s18 = smov 0  }
   0x6 LB: > { %s2006_s19 = sadd.s32 4294967295, %s1932_s18   ;;  %s1447_s20 = sadd.s32 4294967294, %s1932_s18   ;;  %s1932_s18 = sphi %s1991_s18, %s2434_s18   ;;  %s1928_s17 = sphi %s1989_s17, %s2433_s17   ;;  %s1924_s16 = sphi %s1987_s16, %s2432_s16   ;;  %s1920_s15 = sphi %s1985_s15, %s2431_s15  }
   0x7   : > { %p41_p0 = scmp.ne.s32.totalorder %s1924_s16, %s1920_s15  ;;  %p2415_p1 = scmp.eq.s32.totalorder %s2006_s19, 0 }
   0x8   : > { %p134_p3 = scmp.eq.s32.totalorder %s1447_s20, 1  ;;  %p1448_p5 = scmp.ge.s32.totalorder %s1932_s18, 1 }
   0x9   : > { %p2015_p4 = por %p2415_p1, %p41_p0  ;;  %p141_p7 = scmp.lt.s32.totalorder %s1932_s18, 3 }
   0xa   : > { %p2020_p6 = por %p134_p3, %p41_p0  ;;  %s1934_s24 = smov [#allocation5]  }
   0xb   : > { %s2418_s21 = scalar_select %p2015_p4, 1, 0 }
   0xc   : > { %s2419_s22 = scalar_select %p2020_p6, 1, 0 }
   0xd   : > { %p2025_p8 = pnand %p1448_p5, %p141_p7  ;;  %s153_s25 = sshll.u32 %s1934_s24, 4  ;;  %s2029_s25 = int_to_ptr.vmem [resolvable:$true] %s153_s25 }
   0xe   : > { %s1935_s27 = smov [#allocation7]   ;;  %s1776_s5 = scalar_lea.hbm %s2411_s1, 1024 }
   0xf   : > { %p1651_p9 = pneg %p2025_p8  ;;  %s166_s28 = sshll.u32 %s1935_s27, 4  ;;  %s2040_s28 = int_to_ptr.vmem [resolvable:$true] %s166_s28 }
  0x10   : > { %p1777_p12 = scmp.ne.s32.totalorder %s2411_s1, %s1776_s5  ;;  %p1783_p5 = scmp.lt.u32.totalorder %s1776_s5, %s2411_s1 }
  0x11   : > { %p2036_p11 = pnand %p1651_p9, %p2415_p1 }
  0x13   : > { %p1778_p13 = pneg %p2036_p11 }
  0x15   : > { %p1779_p0 = pnand %p1778_p13, %p1777_p12 }
  0x17   : > { %p1780_p3 = pneg %p1779_p0 }
  0x19   : > { %p1785_p7 = pnand %p1783_p5, %p1780_p3 }
  0x1b   : > { %1788 = shalt.err (!%p1785_p7)
}
  0x1c   : > { %s1789_s10 = scalar_lea.vmem %s2029_s25, 1024  ;;  %p1797_p2 = scmp.lt.s32.totalorder %s2029_s25, %s2029_s25 }
  0x1d   : > { %p1790_p9 = scmp.ne.s32.totalorder %s2029_s25, %s1789_s10  ;;  %p1798_p12 = scmp.lt.s32.totalorder %s1789_s10, %s1789_s10 }
  0x1f   : > { %p1792_p10 = pnand %p1790_p9, %p1778_p13  ;;  %p1799_p0 = por %p1798_p12, %p1797_p2 }
  0x21   : > { %p1793_p1 = pneg %p1792_p10 }
  0x23   : > { %p1800_p6 = pnand %p1799_p0, %p1793_p1 }
  0x25   : > { %1803 = shalt.err (!%p1800_p6)
}
  0x26   : > { %s1936_s11 = smov 128   ;;  %s1937_s12 = smov 8  }
  0x27   : > { %1654 = dma.hbm_to_vmem [thread:$0]  (!%p2036_p11), %s2411_s1, 1024, %s2029_s25, [#allocation6], %s1936_s11, %s1936_s11, %s1937_s12  }
  0x28   : > { %s1804_s27 = scalar_lea.hbm %s2412_s2, 512 }
  0x29   : > { %p1805_p2 = scmp.ne.s32.totalorder %s2412_s2, %s1804_s27  ;;  %p1811_p10 = scmp.lt.u32.totalorder %s1804_s27, %s2412_s2 }
  0x2b   : > { %p1807_p1 = pnand %p1805_p2, %p1778_p13 }
  0x2d   : > { %p1808_p6 = pneg %p1807_p1 }
  0x2f   : > { %p1813_p3 = pnand %p1811_p10, %p1808_p6 }
  0x31   : > { %1816 = shalt.err (!%p1813_p3)
}
  0x32   : > { %s1817_s25 = scalar_lea.vmem %s2040_s28, 512  ;;  %p1825_p12 = scmp.lt.s32.totalorder %s2040_s28, %s2040_s28 }
  0x33   : > { %p1818_p5 = scmp.ne.s32.totalorder %s2040_s28, %s1817_s25  ;;  %p1826_p0 = scmp.lt.s32.totalorder %s1817_s25, %s1817_s25 }
  0x35   : > { %p1820_p7 = pnand %p1818_p5, %p1778_p13  ;;  %p1827_p2 = por %p1826_p0, %p1825_p12 }
  0x37   : > { %p1821_p9 = pneg %p1820_p7 }
  0x39   : > { %p1828_p1 = pnand %p1827_p2, %p1821_p9 }
  0x3b   : > { %1831 = shalt.err (!%p1828_p1)
}
  0x3c   : > { %s1938_s7 = smov 64   ;;  %s1939_s8 = smov 4  }
  0x3d   : > { %1657 = dma.hbm_to_vmem [thread:$0]  (!%p2036_p11), %s2412_s2, 512, %s2040_s28, [#allocation6], %s1938_s7, %s1938_s7, %s1939_s8  }
  0x3e   : > { %s2095_s11 = sadd.s32 1, %s1932_s18   ;;  %s28_s13 = sadd.s32 1, %s1928_s17 }
  0x3f   : > { %s25_s12 = ssub.s32 %s1932_s18, %s2095_s11  ;;  %p35_p6 = scmp.ne.s32.totalorder %s1928_s17, %s1924_s16 }
  0x40   : > { %p26_p13 = scmp.eq.s32.totalorder %s25_s12, 0  ;;  %p36_p10 = scmp.eq.s32.totalorder %s1932_s18, 0 }
  0x41   : > { %p2422_p5 = scmp.eq.s32.totalorder %s2006_s19, 1  ;;  %p1668_p9 = scmp.lt.s32.totalorder %s1932_s18, 2 }
  0x42   : > { %s2104_s14 = scalar_select %p26_p13, %s1928_s17, %s28_s13  }
  0x43   : > { %p37_p3 = por %p36_p10, %p35_p6  ;;  %p2108_p7 = por %p2422_p5, %p35_p6 }
  0x44   : > { %s183_s26 = sand.u32 1, %s1928_s17   ;;  %s1453_s28 = sshll.u32 %s1932_s18, 6 }
  0x45   : > { %s2423_s20 = scalar_select %p2108_p7, 1, 0 }
  0x46   : > { %s1452_s24 = sshll.u32 %s183_s26, 2  ;;  %s2118_s30 = scalar_lea.hbm %s2410_s0, %s1453_s28 }
  0x47   : > { %s187_s5 = scalar_lea.vmem [#allocation2], %s1452_s24  ;;  %p2122_p11 = pnand %p1668_p9, %p37_p3 }
  0x48   : > { %s194_s6 = sshll.u32 %s187_s5, 4  ;;  %s184_s7 = scalar_lea.sflag [#allocation3], %s183_s26  ;;  %s2120_s6 = int_to_ptr.vmem [resolvable:$true] %s194_s6 }
  0x49   : > { %s1832_s8 = scalar_lea.hbm %s2118_s30, 64  ;;  %p1834_p0 = pneg %p2122_p11 }
  0x4a   : > { %p1833_p12 = scmp.ne.s32.totalorder %s2118_s30, %s1832_s8  ;;  %s1837_s12 = scalar_lea.hbm %s2410_s0, 128 }
  0x4b   : > { %p1838_p13 = scmp.lt.u32.totalorder %s2118_s30, %s2410_s0  ;;  %p1839_p6 = scmp.lt.u32.totalorder %s1837_s12, %s1832_s8 }
  0x4c   : > { %p1835_p2 = pnand %p1834_p0, %p1833_p12  ;;  %p1841_p3 = scmp.lt.u32.totalorder %s1832_s8, %s2118_s30 }
  0x4d   : > { %p1840_p10 = por %p1839_p6, %p1838_p13 }
  0x4e   : > { %p1836_p1 = pneg %p1835_p2 }
  0x4f   : > { %p1842_p5 = por %p1841_p3, %p1840_p10 }
  0x51   : > { %p1843_p9 = pnand %p1842_p5, %p1836_p1 }
  0x53   : > { %1846 = shalt.err (!%p1843_p9)
}
  0x54   : > { %s1847_s26 = scalar_lea.vmem %s2120_s6, 64  ;;  %s1940_s28 = smov [#allocation2]  }
  0x55   : > { %p1848_p12 = scmp.ne.s32.totalorder %s2120_s6, %s1847_s26  ;;  %s1852_s27 = sshll.u32 %s1940_s28, 4  ;;  %s1853_s27 = int_to_ptr.vmem [resolvable:$false] %s1852_s27 }
  0x56   : > { %s1854_s29 = scalar_lea.vmem %s1853_s27, 128  ;;  %p1855_p4 = scmp.lt.s32.totalorder %s2120_s6, %s1853_s27 }
  0x57   : > { %p1850_p2 = pnand %p1848_p12, %p1834_p0  ;;  %p1856_p13 = scmp.lt.s32.totalorder %s1854_s29, %s1847_s26 }
  0x59   : > { %p1851_p7 = pneg %p1850_p2  ;;  %p1857_p6 = por %p1856_p13, %p1855_p4 }
  0x5b   : > { %p1858_p10 = pnand %p1857_p6, %p1851_p7 }
  0x5d   : > { %1861 = shalt.err (!%p1858_p10)
}
  0x5e   : > { %1661 = dma.hbm_to_vmem [thread:$0]  (!%p2122_p11), %s2118_s30, 64, %s2120_s6, %s184_s7  }
  0x5f   : > { %203 = sbr.rel (%p2025_p8) target bundleno = 1833 (0x729), region = 36  ;;  %s2154_s5 = sand.u32 (!%p2025_p8), 1, %s1924_s16  }
  0x60   : > { %s1455_s8 = sshll.u32 (!%p2025_p8), %s2154_s5, 2  ;;  %s206_s9 = scalar_lea.sflag (!%p2025_p8), [#allocation3], %s2154_s5 }
  0x61   : > { %s209_s10 = scalar_lea.vmem (!%p2025_p8), [#allocation2], %s1455_s8  ;;  %p2425_p4 = scmp.ne.s32.totalorder (!%p2025_p8), %s2418_s21, 0 }
  0x66   : > { %1907 = dma.done.wait (%p2425_p4), %s206_s9, 64  }
  0x67   : > { %1909 = vsyncadd (%p2425_p4), %s206_s9, 4294967232  ;;  %p2426_p7 = scmp.eq.s32.totalorder %s2006_s19, 0 }
  0x69   : > { %1911 = dma.done.wait (%p2426_p7), [#allocation6], 1536   ;;  %p2427_p11 = pmov %p2426_p7 }
  0x6a   : > { %v1941_v0 = vmov 0   ;;  %v1728_v1 = vld [vmem:[#allocation5 + $0x4] ss:$8 sps:$4 sm:$0xff]   ;;  %v1730_v2 = vld [vmem:[#allocation5] ss:$8 sps:$4 sm:$0xff]   ;;  %vm292_vm0 = vcmask 523264  }
  0x6b   : > { %1913 = vsyncadd (%p2427_p11), [#allocation6], 4294965760  ;;  %328 = vmatprep.mubr.bf16.mxu0 %v1941_v0  ;;  %296 = vmatprep.subr.bf16.mxu0 %v1728_v1  ;;  %v1731_v3 = vld [vmem:[#allocation5 + $0x14] ss:$8 sps:$4 sm:$0xff]   ;;  %v1733_v4 = vld [vmem:[#allocation5 + $0x10] ss:$8 sps:$4 sm:$0xff]  }
  0x6c   : > { %297 = vmatpush1.bf16.msra.mxu0 %v1730_v2  ;;  %v1734_v5 = vld [vmem:[#allocation5 + $0x24] ss:$8 sps:$4 sm:$0xff]   ;;  %v1736_v6 = vld [vmem:[#allocation5 + $0x20] ss:$8 sps:$4 sm:$0xff]   ;;  %v1737_v7 = vld [vmem:[#allocation5 + $0x34] ss:$8 sps:$4 sm:$0xff]  }
  0x6d   : > { %298 = vmatprep.subr.bf16.mxu0 %v1731_v3  ;;  %v1739_v8 = vld [vmem:[#allocation5 + $0x30] ss:$8 sps:$4 sm:$0xff]   ;;  %v1942_v10 = vmov 0.0   ;;  %vm1943_vm1 = vmmov 0   ;;  %s1944_s21 = smov 56   ;;  %s1945_s23 = smov 64  }
  0x6e   : > { %v243_v9 = vld [vmem:[%s209_s10] sm:$0xf]  ;;  %1531 = vmatprep.subr.bf16.mxu1 %v1942_v10  ;;  %1533 = vmatprep.mubr.msk.bf16.mxu1 %vm1943_vm1, %v1942_v10  ;;  %s1946_s30 = smov 120   ;;  %s1947_s6 = smov 48   ;;  %vm342_vm2 = vcmask 64512   ;;  %vm402_vm3 = vcmask 1043456  }
  0x6f   : > { %s1948_s25 = smov 112   ;;  %s1949_s7 = smov 40   ;;  %vm1248_vm4 = vcmask 130048   ;;  %vm1250_vm5 = vcmask 195584   ;;  %vm1252_vm6 = vcmask 261120   ;;  %vm1254_vm7 = vcmask 326656  }
  0x70   : > { %299 = vmatpush1.bf16.msra.mxu0 %v1733_v4  ;;  %s1950_s12 = smov 104   ;;  %s1951_s13 = smov 32   ;;  %vm1256_vm8 = vcmask 392192   ;;  %vm1258_vm9 = vcmask 457728  }
  0x71   : > { %300 = vmatprep.subr.bf16.mxu0 %v1734_v5  ;;  %s1952_s24 = smov 96   ;;  %s1953_s26 = smov 24  }
  0x72   : > { %s1954_s28 = smov 16   ;;  %s1955_s27 = smov 80  }
  0x73   : > { %s1956_s29 = smov 8   ;;  %s1957_s8 = smov 72  }
  0x74   : > { %301 = vmatpush1.bf16.msra.mxu0 %v1736_v6  ;;  %s1958_s9 = smov 88   ;;  %s1458_s10 = sshll.u32 %s2154_s5, 3 }
  0x75   : > { %302 = vmatprep.subr.bf16.mxu0 %v1737_v7  ;;  %p2428_p0 = scmp.ne.s32.totalorder %s2423_s20, 0 }
  0x78   : > { %303 = vmatpush1.bf16.msra.mxu0 %v1739_v8 }
  0x79   : > { %1555 = vmatprep.subr.bf16.mxu0 %v1942_v10 }
  0x7b   : > { %1467 = vmatmul.mubr.msk.bf16.vlgmr.msra.gmra.mrb[0].mxu0 %vm292_vm0, %v243_v9 }
  0x7c   : > { %1557 = vmatprep.mubr.msk.bf16.mxu0 %vm1943_vm1, %v1942_v10 }
 0x14e   : > { %v330_v11 = vpop.f32.mrb[0].mxu0 }
 0x14f   : > { %v2173_v12 = vpack.c.bf16 %v330_v11, %v330_v11  ;;  %v332_v13 = vpop.f32.mrb[1].mxu0 }
 0x150   : > { %v334_v14 = vpop.f32.mrb[2].mxu0  ;;  %v2208_v20 = vpack.c.bf16 %v332_v13, %v332_v13 }
 0x151   : > { %450 = vrot.lane.b32.xlu1 %v2173_v12, %s1944_s21  ;;  %340 = vrot.lane.b32.xlu0 %v2173_v12, %s1945_s23  ;;  %v335_v15 = vpop.f32.mrb[3].mxu0 }
 0x152   : > { %v404_v23 = vsel %vm402_vm3, %v2208_v20, 0 }
 0x155   : > { %448 = vrot.lane.b32.xlu1 %v2173_v12, %s1946_s30 }
 0x159   : > { %561 = vrot.lane.b32.xlu1 %v2173_v12, %s1947_s6 }
 0x15d   : > { %559 = vrot.lane.b32.xlu1 %v2173_v12, %s1948_s25 }
 0x161   : > { %671 = vrot.lane.b32.xlu1 %v2173_v12, %s1949_s7 }
 0x165   : > { %669 = vrot.lane.b32.xlu1 %v2173_v12, %s1950_s12 }
 0x169   : > { %781 = vrot.lane.b32.xlu1 %v2173_v12, %s1951_s13 }
 0x16d   : > { %779 = vrot.lane.b32.xlu1 %v2173_v12, %s1952_s24 }
 0x171   : > { %891 = vrot.lane.b32.xlu1 %v2173_v12, %s1953_s26 }
 0x175   : > { %1001 = vrot.lane.b32.xlu1 %v2173_v12, %s1954_s28 }
 0x179   : > { %999 = vrot.lane.b32.xlu1 %v2173_v12, %s1955_s27 }
 0x17d   : > { %1111 = vrot.lane.b32.xlu1 %v2173_v12, %s1956_s29 }
 0x181   : > { %1109 = vrot.lane.b32.xlu1 %v2173_v12, %s1957_s8 }
 0x1c3   : > { %v2202_v16 = vpop.permute.xlu1 %450  ;;  %v341_v17 = vpop.permute.xlu0 %340 }
 0x1c4   : > { %v347_v18 = vsel %vm342_vm2, %v341_v17, 0  ;;  %v456_v0 = vsel %vm342_vm2, %v2202_v16, 0 }
 0x1c5   : > { %1532 = vmatpush3.bf16.xpose.msra.mxu1 %v347_v18 }
 0x1c6   : > { %1537 = vmatprep.subr.bf16.mxu1 %v1942_v10 }
 0x1c7   : > { %v2206_v19 = vpop.permute.xlu1 %448 }
 0x1cb   : > { %v562_v21 = vpop.permute.xlu1 %561 }
 0x1cc   : > { %v567_v22 = vsel %vm342_vm2, %v562_v21, 0  ;;  %1534 = vmatmul.mubr.msk.bf16.vlgmr.msra.gmra.mrb[0].mxu1 %vm342_vm2, %v2173_v12 }
 0x1cd   : > { %1538 = vmatpush3.bf16.msra.mxu1 %v404_v23  ;;  %1556 = vmatpush3.bf16.xpose.msra.mxu0 %v567_v22 }
 0x1ce   : > { %1567 = vmatprep.subr.bf16.mxu0 %v1942_v10  ;;  %1539 = vmatprep.mubr.msk.bf16.mxu1 %vm1943_vm1, %v1942_v10 }
 0x1cf   : > { %v560_v24 = vpop.permute.xlu1 %559  ;;  %1543 = vmatprep.subr.bf16.mxu1 %v1942_v10 }
 0x1d3   : > { %v672_v25 = vpop.permute.xlu1 %671 }
 0x1d4   : > { %v677_v26 = vsel %vm342_vm2, %v672_v25, 0  ;;  %1558 = vmatmul.mubr.msk.bf16.vlgmr.msra.gmra.mrb[4].mxu0 %vm342_vm2, %v560_v24 }
 0x1d5   : > { %1568 = vmatpush3.bf16.xpose.msra.mxu0 %v677_v26  ;;  %1569 = vmatprep.mubr.msk.bf16.mxu0 %vm1943_vm1, %v1942_v10 }
 0x1d6   : > { %1579 = vmatprep.subr.bf16.mxu0 %v1942_v10 }
 0x1d7   : > { %v670_v27 = vpop.permute.xlu1 %669 }
 0x1db   : > { %v782_v28 = vpop.permute.xlu1 %781 }
 0x1dc   : > { %v787_v29 = vsel %vm342_vm2, %v782_v28, 0  ;;  %1570 = vmatmul.mubr.msk.bf16.vlgmr.msra.gmra.mrb[8].mxu0 %vm342_vm2, %v670_v27 }
 0x1dd   : > { %1580 = vmatpush3.bf16.xpose.msra.mxu0 %v787_v29  ;;  %1581 = vmatprep.mubr.msk.bf16.mxu0 %vm1943_vm1, %v1942_v10 }
 0x1de   : > { %1591 = vmatprep.subr.bf16.mxu0 %v1942_v10 }
 0x1df   : > { %v780_v30 = vpop.permute.xlu1 %779 }
 0x1e3   : > { %v892_v31 = vpop.permute.xlu1 %891 }
 0x1e4   : > { %v897_v32 = vsel %vm342_vm2, %v892_v31, 0  ;;  %1582 = vmatmul.mubr.msk.bf16.vlgmr.msra.gmra.mrb[12].mxu0 %vm342_vm2, %v780_v30 }
 0x1e5   : > { %1592 = vmatpush3.bf16.xpose.msra.mxu0 %v897_v32  ;;  %1593 = vmatprep.mubr.msk.bf16.mxu0 %vm1943_vm1, %v1942_v10 }
 0x1e6   : > { %1603 = vmatprep.subr.bf16.mxu0 %v1942_v10 }
 0x1e7   : > { %v1002_v53 = vpop.permute.xlu1 %1001 }
 0x1e8   : > { %v1007_v59 = vsel %vm342_vm2, %v1002_v53, 0 }
 0x1eb   : > { %v1000_v57 = vpop.permute.xlu1 %999 }
 0x1ef   : > { %v1112_v60 = vpop.permute.xlu1 %1111 }
 0x1f0   : > { %v1117_v61 = vsel %vm342_vm2, %v1112_v60, 0 }
 0x1f3   : > { %v1110_v1 = vpop.permute.xlu1 %1109 }
 0x29f   : > { %v383_v33 = vpop.f32.mrb[0].mxu1 }
 0x2a0   : > { %v1535_v34 = vpop.f32.mrb[1].mxu1  ;;  %v389_v35 = vsel %vm342_vm2, %v383_v33, -inf }
 0x2a1   : > { %390 = vmax.xlane.f32.xlu0 %v389_v35  ;;  %v386_v36 = vpop.f32.mrb[2].mxu1 }
 0x2a2   : > { %v1536_v37 = vpop.f32.mrb[3].mxu1 }
 0x2a7   : > { %v2235_v38 = vpop.f32.mrb[4].mxu0 }
 0x2a8   : > { %v1559_v39 = vpop.f32.mrb[5].mxu0  ;;  %v609_v51 = vsel %vm342_vm2, %v2235_v38, -inf }
 0x2a9   : > { %v606_v40 = vpop.f32.mrb[6].mxu0 }
 0x2aa   : > { %v1560_v41 = vpop.f32.mrb[7].mxu0 }
 0x2af   : > { %v2237_v42 = vpop.f32.mrb[8].mxu0 }
 0x2b0   : > { %v1571_v43 = vpop.f32.mrb[9].mxu0  ;;  %v719_v52 = vsel %vm342_vm2, %v2237_v42, -inf }
 0x2b1   : > { %v716_v44 = vpop.f32.mrb[10].mxu0 }
 0x2b2   : > { %v1572_v45 = vpop.f32.mrb[11].mxu0 }
 0x2b7   : > { %889 = vrot.lane.b32.xlu0 %v2173_v12, %s1958_s9  ;;  %v2241_v46 = vpop.f32.mrb[12].mxu0 }
 0x2b8   : > { %v1583_v47 = vpop.f32.mrb[13].mxu0  ;;  %v829_v48 = vsel %vm342_vm2, %v2241_v46, -inf }
 0x2b9   : > { %830 = vmax.xlane.f32.xlu1 %v829_v48  ;;  %v826_v49 = vpop.f32.mrb[14].mxu0 }
 0x2ba   : > { %v1584_v50 = vpop.f32.mrb[15].mxu0 }
 0x2bb   : > { %509 = vrot.lane.b32.xlu0 %v2208_v20, %s1946_s30  ;;  %s1491_s30 = sshll.u32 %s2006_s19, 7  ;;  %s1345_s19 = scalar_lea.sflag [#allocation4], %s2154_s5 }
 0x2da   : > { %610 = vmax.xlane.f32.xlu0 %v609_v51 }
 0x2de   : > { %720 = vmax.xlane.f32.xlu0 %v719_v52 }
 0x2f4   : > { %729 = vrot.lane.b32.xlu0 %v2208_v20, %s1950_s12 }
 0x32e   : > { %v391_v54 = vpop.xlane.xlu0 %390 }
 0x32f   : > { %v392_v55 = vsub.f32 %v383_v33, %v391_v54 }
 0x331   : > { %v393_v56 = vmul.f32 1.442695, %v392_v55 }
 0x332   : > { %v890_v58 = vpop.permute.xlu0 %889 }
 0x333   : > { %1744 = vpow2.f32 %v393_v56  ;;  %1594 = vmatmul.mubr.msk.bf16.vlgmr.msra.gmra.mrb[16].mxu0 %vm342_vm2, %v890_v58 }
 0x334   : > { %1604 = vmatpush3.bf16.xpose.msra.mxu0 %v1007_v59  ;;  %1605 = vmatprep.mubr.msk.bf16.mxu0 %vm1943_vm1, %v1942_v10 }
 0x335   : > { %1615 = vmatprep.subr.bf16.mxu0 %v1942_v10 }
 0x336   : > { %v510_v2 = vpop.permute.xlu0 %509 }
 0x337   : > { %v515_v3 = vsel %vm402_vm3, %v510_v2, 0 }
 0x33b   : > { %1606 = vmatmul.mubr.msk.bf16.vlgmr.msra.gmra.mrb[20].mxu0 %vm342_vm2, %v1000_v57 }
 0x33c   : > { %1616 = vmatpush3.bf16.xpose.msra.mxu0 %v1117_v61  ;;  %1617 = vmatprep.mubr.msk.bf16.mxu0 %vm1943_vm1, %v1942_v10 }
 0x33d   : > { %v2262_v62 = vpop.eup %1744  ;;  %1627 = vmatprep.subr.bf16.mxu0 %v1942_v10 }
 0x33e   : > { %v398_v63 = vpack.c.bf16 %v2262_v62, %v2262_v62 }
 0x340   : > { %1540 = vmatmul.mubr.msk.bf16.vlgmr.msra.gmra.mrb[4].mxu1 %vm342_vm2, %v398_v63 }
 0x341   : > { %1544 = vmatpush3.bf16.xpose.msra.mxu1 %v456_v0  ;;  %1545 = vmatprep.mubr.msk.bf16.mxu1 %vm1943_vm1, %v1942_v10 }
 0x342   : > { %1549 = vmatprep.subr.bf16.mxu1 %v1942_v10 }
 0x343   : > { %1618 = vmatmul.mubr.msk.bf16.vlgmr.msra.gmra.mrb[24].mxu0 %vm342_vm2, %v1110_v1 }
 0x344   : > { %1635 = vmatprep.mubr.msk.bf16.mxu0 %vm1943_vm1, %v1942_v10 }
 0x346   : > { %v831_v33 = vpop.xlane.xlu1 %830 }
 0x347   : > { %v832_v34 = vsub.f32 %v2241_v46, %v831_v33 }
 0x348   : > { %1546 = vmatmul.mubr.msk.bf16.vlgmr.msra.gmra.mrb[8].mxu1 %vm342_vm2, %v2206_v19 }
 0x349   : > { %1550 = vmatpush3.bf16.msra.mxu1 %v515_v3  ;;  %1551 = vmatprep.mubr.msk.bf16.mxu1 %vm1943_vm1, %v1942_v10  ;;  %v833_v36 = vmul.f32 1.442695, %v832_v34 }
 0x34a   : > { %1561 = vmatprep.subr.bf16.mxu1 %v1942_v10 }
 0x367   : > { %v611_v4 = vpop.xlane.xlu0 %610 }
 0x368   : > { %v612_v5 = vsub.f32 %v2235_v38, %v611_v4 }
 0x36b   : > { %v721_v31 = vpop.xlane.xlu0 %720 }
 0x36c   : > { %v722_v32 = vsub.f32 %v2237_v42, %v721_v31  ;;  %v613_v42 = vmul.f32 1.442695, %v612_v5 }
 0x36e   : > { %v723_v35 = vmul.f32 1.442695, %v722_v32 }
 0x36f   : > { %v730_v45 = vpop.permute.xlu0 %729 }
 0x370   : > { %1746 = vpow2.f32 %v723_v35  ;;  %v735_v1 = vsel %vm402_vm3, %v730_v45, 0 }
 0x371   : > { %1748 = vpow2.f32 %v833_v36 }
 0x372   : > { %1750 = vpow2.f32 %v613_v42 }
 0x37a   : > { %v1747_v37 = vpop.eup %1746 }
 0x37b   : > { %v725_v38 = vsel %vm342_vm2, %v1747_v37, 0.0  ;;  %v1749_v39 = vpop.eup %1748  ;;  %v728_v3 = vpack.c.bf16 %v1747_v37, %v1747_v37 }
 0x37c   : > { %v835_v40 = vsel %vm342_vm2, %v1749_v39, 0.0  ;;  %v1751_v43 = vpop.eup %1750  ;;  %v838_v5 = vpack.c.bf16 %v1749_v39, %v1749_v39 }
 0x37d   : > { %v615_v44 = vsel %vm342_vm2, %v1751_v43, 0.0  ;;  %v618_v0 = vpack.c.bf16 %v1751_v43, %v1751_v43 }
 0x406   : > { %v933_v6 = vpop.f32.mrb[16].mxu0 }
 0x407   : > { %v1595_v7 = vpop.f32.mrb[17].mxu0  ;;  %v939_v8 = vsel %vm342_vm2, %v933_v6, -inf }
 0x408   : > { %940 = vmax.xlane.f32.xlu1 %v939_v8  ;;  %v936_v9 = vpop.f32.mrb[18].mxu0 }
 0x409   : > { %v1596_v11 = vpop.f32.mrb[19].mxu0 }
 0x40e   : > { %v2284_v12 = vpop.f32.mrb[20].mxu0 }
 0x40f   : > { %v1607_v13 = vpop.f32.mrb[21].mxu0  ;;  %v1049_v41 = vsel %vm342_vm2, %v2284_v12, -inf }
 0x410   : > { %v1046_v14 = vpop.f32.mrb[22].mxu0 }
 0x411   : > { %v1608_v15 = vpop.f32.mrb[23].mxu0 }
 0x413   : > { %v2286_v16 = vpop.f32.mrb[4].mxu1 }
 0x414   : > { %v1541_v17 = vpop.f32.mrb[5].mxu1 }
 0x415   : > { %v443_v18 = vpop.f32.mrb[6].mxu1 }
 0x416   : > { %v1542_v19 = vpop.f32.mrb[7].mxu1  ;;  %v1153_v21 = vpop.f32.mrb[24].mxu0 }
 0x417   : > { %v1619_v22 = vpop.f32.mrb[25].mxu0  ;;  %v1159_v23 = vsel %vm342_vm2, %v1153_v21, -inf }
 0x418   : > { %1160 = vmax.xlane.f32.xlu0 %v1159_v23  ;;  %v1156_v24 = vpop.f32.mrb[26].mxu0  ;;  %v395_v22 = vsel %vm342_vm2, %v2262_v62, 0.0 }
 0x419   : > { %v1620_v25 = vpop.f32.mrb[27].mxu0 }
 0x41b   : > { %v492_v26 = vpop.f32.mrb[8].mxu1 }
 0x41c   : > { %v1547_v27 = vpop.f32.mrb[9].mxu1  ;;  %v498_v28 = vsel %vm342_vm2, %v492_v26, -inf }
 0x41d   : > { %v495_v29 = vpop.f32.mrb[10].mxu1  ;;  %499 = vmax.xlane.f32.xlu1 %v498_v28 }
 0x41e   : > { %v1548_v30 = vpop.f32.mrb[11].mxu1 }
 0x42e   : > { %619 = vrot.lane.b32.xlu1 %v2208_v20, %s1948_s25  ;;  %839 = vrot.lane.b32.xlu0 %v2208_v20, %s1952_s24 }
 0x44d   : > { %726 = vadd.xlane.f32.xlu0 %v725_v38 }
 0x451   : > { %836 = vadd.xlane.f32.xlu0 %v835_v40 }
 0x452   : > { %1050 = vmax.xlane.f32.xlu1 %v1049_v41 }
 0x463   : > { %949 = vrot.lane.b32.xlu1 %v2208_v20, %s1958_s9 }
 0x467   : > { %1059 = vrot.lane.b32.xlu1 %v2208_v20, %s1955_s27 }
 0x46b   : > { %1169 = vrot.lane.b32.xlu1 %v2208_v20, %s1957_s8 }
 0x48f   : > { %616 = vadd.xlane.f32.xlu1 %v615_v44 }
 0x495   : > { %v941_v46 = vpop.xlane.xlu1 %940 }
 0x496   : > { %v942_v47 = vsub.f32 %v933_v6, %v941_v46 }
 0x498   : > { %v943_v51 = vmul.f32 1.442695, %v942_v47 }
 0x4a5   : > { %v1161_v48 = vpop.xlane.xlu0 %1160 }
 0x4a6   : > { %v1162_v52 = vsub.f32 %v1153_v21, %v1161_v48 }
 0x4a8   : > { %v1163_v54 = vmul.f32 1.442695, %v1162_v52  ;;  %v1740_v52 = vld [vmem:[#allocation7] sm:$0xff]  }
 0x4a9   : > { %v840_v2 = vpop.permute.xlu0 %839  ;;  %1628 = vmatpush3.bf16.msra.mxu0 %v1740_v52 }
 0x4aa   : > { %v500_v49 = vpop.xlane.xlu1 %499  ;;  %v845_v4 = vsel %vm402_vm3, %v840_v2, 0  ;;  %1629 = vmatprep.subr.bf16.mxu0 %v1942_v10 }
 0x4ab   : > { %v501_v50 = vsub.f32 %v492_v26, %v500_v49 }
 0x4ad   : > { %v502_v53 = vmul.f32 1.442695, %v501_v50 }
 0x4ae   : > { %v620_v55 = vpop.permute.xlu1 %619 }
 0x4af   : > { %1752 = vpow2.f32 %v502_v53  ;;  %v625_v59 = vsel %vm402_vm3, %v620_v55, 0 }
 0x4b0   : > { %1754 = vpow2.f32 %v943_v51 }
 0x4b1   : > { %1756 = vpow2.f32 %v1163_v54  ;;  %v1741_v54 = vld [vmem:[#allocation7 + $0x8] sm:$0xff]  }
 0x4b2   : > { %1630 = vmatpush3.bf16.msra.mxu0 %v1741_v54 }
 0x4b3   : > { %1631 = vmatprep.subr.bf16.mxu0 %v1942_v10 }
 0x4b9   : > { %v1753_v20 = vpop.eup %1752 }
 0x4ba   : > { %v504_v56 = vsel %vm342_vm2, %v1753_v20, 0.0  ;;  %v507_v57 = vpack.c.bf16 %v1753_v20, %v1753_v20  ;;  %v1755_v58 = vpop.eup %1754 }
 0x4bb   : > { %505 = vadd.xlane.f32.xlu0 %v504_v56  ;;  %v945_v60 = vsel %vm342_vm2, %v1755_v58, 0.0  ;;  %v1757_v61 = vpop.eup %1756  ;;  %v948_v13 = vpack.c.bf16 %v1755_v58, %v1755_v58  ;;  %v1742_v56 = vld [vmem:[#allocation7 + $0x10] sm:$0xff]  }
 0x4bc   : > { %1552 = vmatmul.mubr.msk.bf16.vlgmr.msra.gmra.mrb[12].mxu1 %vm342_vm2, %v507_v57  ;;  %v1165_v63 = vsel %vm342_vm2, %v1757_v61, 0.0  ;;  %v1168_v23 = vpack.c.bf16 %v1757_v61, %v1757_v61  ;;  %1632 = vmatpush3.bf16.msra.mxu0 %v1742_v56 }
 0x4bd   : > { %1562 = vmatpush3.bf16.msra.mxu1 %v625_v59  ;;  %1563 = vmatprep.mubr.msk.bf16.mxu1 %vm1943_vm1, %v1942_v10 }
 0x4be   : > { %1573 = vmatprep.subr.bf16.mxu1 %v1942_v10  ;;  %1633 = vmatprep.subr.bf16.mxu0 %v1942_v10 }
 0x4bf   : > { %946 = vadd.xlane.f32.xlu0 %v945_v60 }
 0x4c3   : > { %1166 = vadd.xlane.f32.xlu0 %v1165_v63  ;;  %v1743_v63 = vld [vmem:[#allocation7 + $0x18] sm:$0xff]  }
 0x4c4   : > { %1564 = vmatmul.mubr.msk.bf16.vlgmr.msra.gmra.mrb[16].mxu1 %vm342_vm2, %v618_v0  ;;  %1634 = vmatpush3.bf16.msra.mxu0 %v1743_v63 }
 0x4c5   : > { %1574 = vmatpush3.bf16.msra.mxu1 %v735_v1  ;;  %1575 = vmatprep.mubr.msk.bf16.mxu1 %vm1943_vm1, %v1942_v10 }
 0x4c6   : > { %1585 = vmatprep.subr.bf16.mxu1 %v1942_v10 }
 0x4cc   : > { %1576 = vmatmul.mubr.msk.bf16.vlgmr.msra.gmra.mrb[20].mxu1 %vm342_vm2, %v728_v3 }
 0x4cd   : > { %1586 = vmatpush3.bf16.msra.mxu1 %v845_v4  ;;  %1587 = vmatprep.mubr.msk.bf16.mxu1 %vm1943_vm1, %v1942_v10 }
 0x4ce   : > { %1597 = vmatprep.subr.bf16.mxu1 %v1942_v10 }
 0x4d4   : > { %1588 = vmatmul.mubr.msk.bf16.vlgmr.msra.gmra.mrb[24].mxu1 %vm342_vm2, %v838_v5 }
 0x4d5   : > { %1599 = vmatprep.mubr.msk.bf16.mxu1 %vm1943_vm1, %v1942_v10 }
 0x4da   : > { %v727_v24 = vpop.xlane.xlu0 %726 }
 0x4de   : > { %v837_v25 = vpop.xlane.xlu0 %836 }
 0x4df   : > { %v1051_v6 = vpop.xlane.xlu1 %1050 }
 0x4e0   : > { %v1052_v7 = vsub.f32 %v2284_v12, %v1051_v6 }
 0x4e2   : > { %v1053_v8 = vmul.f32 1.442695, %v1052_v7 }
 0x4e3   : > { %v950_v9 = vpop.permute.xlu1 %949 }
 0x4e4   : > { %1758 = vpow2.f32 %v1053_v8  ;;  %v955_v11 = vsel %vm402_vm3, %v950_v9, 0 }
 0x4e5   : > { %1598 = vmatpush3.bf16.msra.mxu1 %v955_v11 }
 0x4e6   : > { %1609 = vmatprep.subr.bf16.mxu1 %v1942_v10 }
 0x4e7   : > { %v1060_v14 = vpop.permute.xlu1 %1059 }
 0x4e8   : > { %v1065_v15 = vsel %vm402_vm3, %v1060_v14, 0  ;;  %1600 = vmatmul.mubr.msk.bf16.vlgmr.msra.gmra.mrb[28].mxu1 %vm342_vm2, %v948_v13 }
 0x4e9   : > { %1610 = vmatpush3.bf16.msra.mxu1 %v1065_v15  ;;  %1611 = vmatprep.mubr.msk.bf16.mxu1 %vm1943_vm1, %v1942_v10 }
 0x4ea   : > { %1621 = vmatprep.subr.bf16.mxu1 %v1942_v10 }
 0x4eb   : > { %v1170_v17 = vpop.permute.xlu1 %1169 }
 0x4ec   : > { %v1175_v21 = vsel %vm402_vm3, %v1170_v17, 0 }
 0x4ee   : > { %v1759_v12 = vpop.eup %1758 }
 0x4ef   : > { %v1055_v18 = vsel %vm342_vm2, %v1759_v12, 0.0  ;;  %v1058_v19 = vpack.c.bf16 %v1759_v12, %v1759_v12 }
 0x4f0   : > { %1056 = vadd.xlane.f32.xlu1 %v1055_v18 }
 0x4f1   : > { %1612 = vmatmul.mubr.msk.bf16.vlgmr.msra.gmra.mrb[32].mxu1 %vm342_vm2, %v1058_v19 }
 0x4f2   : > { %1622 = vmatpush3.bf16.msra.mxu1 %v1175_v21  ;;  %1623 = vmatprep.mubr.msk.bf16.mxu1 %vm1943_vm1, %v1942_v10 }
 0x4f4   : > { %396 = vadd.xlane.f32.xlu1 %v395_v22 }
 0x4f9   : > { %1624 = vmatmul.mubr.msk.bf16.vlgmr.msra.gmra.mrb[36].mxu1 %vm342_vm2, %v1168_v23 }
 0x51c   : > { %v617_v27 = vpop.xlane.xlu1 %616 }
 0x548   : > { %v506_v26 = vpop.xlane.xlu0 %505 }
 0x549   : > { %1760 = vrcp.f32 %v506_v26 }
 0x54a   : > { %1762 = vrcp.f32 %v617_v27 }
 0x54b   : > { %1764 = vrcp.f32 %v727_v24 }
 0x54c   : > { %1766 = vrcp.f32 %v837_v25  ;;  %v947_v51 = vpop.xlane.xlu0 %946 }
 0x54d   : > { %1768 = vrcp.f32 %v947_v51 }
 0x550   : > { %v1167_v61 = vpop.xlane.xlu0 %1166 }
 0x553   : > { %v1761_v28 = vpop.eup %1760 }
 0x554   : > { %v1763_v62 = vpop.eup %1762 }
 0x555   : > { %v1765_v39 = vpop.eup %1764 }
 0x556   : > { %v1767_v45 = vpop.eup %1766 }
 0x557   : > { %v1769_v20 = vpop.eup %1768 }
 0x57d   : > { %v1057_v53 = vpop.xlane.xlu1 %1056 }
 0x57e   : > { %1770 = vrcp.f32 %v1057_v53 }
 0x57f   : > { %1772 = vrcp.f32 %v1167_v61 }
 0x581   : > { %v397_v10 = vpop.xlane.xlu1 %396 }
 0x582   : > { %1774 = vrcp.f32 %v397_v10 }
 0x588   : > { %v1771_v0 = vpop.eup %1770 }
 0x589   : > { %v1773_v6 = vpop.eup %1772 }
 0x58c   : > { %v1775_v12 = vpop.eup %1774 }
 0x58d   : > { %v447_v18 = vmul.f32 %v1775_v12, %v2286_v16 }
 0x58f   : > { %v551_v29 = vpop.f32.mrb[12].mxu1 }
 0x590   : > { %v558_v30 = vmul.f32 %v1761_v28, %v551_v29  ;;  %v1553_v31 = vpop.f32.mrb[13].mxu1 }
 0x591   : > { %v554_v32 = vpop.f32.mrb[14].mxu1  ;;  %v1484_v31 = vld [vmem:[%s2413_s3] ss:$0 sm:$0xff] }
 0x592   : > { %v1554_v33 = vpop.f32.mrb[15].mxu1  ;;  %1220 = vrot.lane.b32.xlu0 %v558_v30, %s1956_s29 }
 0x597   : > { %v661_v34 = vpop.f32.mrb[16].mxu1 }
 0x598   : > { %v668_v35 = vmul.f32 %v1763_v62, %v661_v34  ;;  %v1565_v36 = vpop.f32.mrb[17].mxu1 }
 0x599   : > { %v664_v37 = vpop.f32.mrb[18].mxu1 }
 0x59a   : > { %v1566_v38 = vpop.f32.mrb[19].mxu1  ;;  %1224 = vrot.lane.b32.xlu1 %v668_v35, %s1954_s28 }
 0x59f   : > { %v771_v40 = vpop.f32.mrb[20].mxu1 }
 0x5a0   : > { %v778_v41 = vmul.f32 %v1765_v39, %v771_v40  ;;  %v1577_v42 = vpop.f32.mrb[21].mxu1 }
 0x5a1   : > { %v774_v43 = vpop.f32.mrb[22].mxu1 }
 0x5a2   : > { %v1578_v44 = vpop.f32.mrb[23].mxu1  ;;  %1228 = vrot.lane.b32.xlu1 %v778_v41, %s1953_s26  ;;  %s1959_s26 = smov [#allocation8]  }
 0x5a3   : > { %s1866_s28 = sshll.u32 %s1959_s26, 4  ;;  %s1867_s28 = int_to_ptr.vmem [resolvable:$false] %s1866_s28 }
 0x5a4   : > { %s1868_s27 = scalar_lea.vmem %s1867_s28, 256 }
 0x5a7   : > { %v881_v46 = vpop.f32.mrb[24].mxu1 }
 0x5a8   : > { %v888_v47 = vmul.f32 %v1767_v45, %v881_v46  ;;  %v1589_v48 = vpop.f32.mrb[25].mxu1 }
 0x5a9   : > { %v884_v49 = vpop.f32.mrb[26].mxu1 }
 0x5aa   : > { %v1590_v50 = vpop.f32.mrb[27].mxu1  ;;  %1232 = vrot.lane.b32.xlu1 %v888_v47, %s1951_s13  ;;  %s2365_s13 = scalar_lea.hbm %s2414_s4, %s1491_s30 }
 0x5bb   : > { %v991_v55 = vpop.f32.mrb[28].mxu1 }
 0x5bc   : > { %v998_v57 = vmul.f32 %v1769_v20, %v991_v55  ;;  %v1601_v58 = vpop.f32.mrb[29].mxu1 }
 0x5bd   : > { %v994_v59 = vpop.f32.mrb[30].mxu1 }
 0x5be   : > { %v1602_v60 = vpop.f32.mrb[31].mxu1  ;;  %1236 = vrot.lane.b32.xlu0 %v998_v57, %s1949_s7 }
 0x5c4   : > { %v1101_v1 = vpop.f32.mrb[32].mxu1 }
 0x5c5   : > { %v1108_v2 = vmul.f32 %v1771_v0, %v1101_v1  ;;  %v1613_v3 = vpop.f32.mrb[33].mxu1 }
 0x5c6   : > { %v1104_v4 = vpop.f32.mrb[34].mxu1 }
 0x5c7   : > { %v1614_v5 = vpop.f32.mrb[35].mxu1  ;;  %1240 = vrot.lane.b32.xlu1 %v1108_v2, %s1947_s6  ;;  %s241_s6 = scalar_lea.vmem [#allocation8], %s1458_s10 }
 0x5c8   : > { %s1358_s25 = sshll.u32 %s241_s6, 4  ;;  %s2367_s25 = int_to_ptr.vmem [resolvable:$true] %s1358_s25 }
 0x5c9   : > { %s1862_s24 = scalar_lea.vmem %s2367_s25, 128  ;;  %p1869_p5 = scmp.lt.s32.totalorder %s2367_s25, %s1867_s28 }
 0x5ca   : > { %p1863_p8 = scmp.ne.s32.totalorder %s2367_s25, %s1862_s24  ;;  %p1870_p9 = scmp.lt.s32.totalorder %s1868_s27, %s1862_s24 }
 0x5cc   : > { %v1211_v7 = vpop.f32.mrb[36].mxu1  ;;  %p1864_p1 = pnand %p1863_p8, %p2428_p0  ;;  %p1871_p12 = por %p1870_p9, %p1869_p5 }
 0x5cd   : > { %v1218_v8 = vmul.f32 %v1773_v6, %v1211_v7  ;;  %v1625_v9 = vpop.f32.mrb[37].mxu1 }
 0x5ce   : > { %v1214_v11 = vpop.f32.mrb[38].mxu1  ;;  %p1865_p3 = pneg %p1864_p1 }
 0x5cf   : > { %v1626_v13 = vpop.f32.mrb[39].mxu1  ;;  %1244 = vrot.lane.b32.xlu0 %v1218_v8, %s1944_s21 }
 0x5d0   : > { %p1872_p2 = pnand %p1871_p12, %p1865_p3 }
 0x604   : > { %v1221_v17 = vpop.permute.xlu0 %1220 }
 0x605   : > { %v1247_v21 = vsel %vm342_vm2, %v447_v18, %v1221_v17 }
 0x60c   : > { %v1225_v14 = vpop.permute.xlu1 %1224 }
 0x60d   : > { %v1249_v22 = vsel %vm1248_vm4, %v1247_v21, %v1225_v14 }
 0x614   : > { %v1229_v15 = vpop.permute.xlu1 %1228 }
 0x615   : > { %v1251_v24 = vsel %vm1250_vm5, %v1249_v22, %v1229_v15 }
 0x61c   : > { %v1233_v19 = vpop.permute.xlu1 %1232 }
 0x61d   : > { %v1253_v26 = vsel %vm1252_vm6, %v1251_v24, %v1233_v19 }
 0x630   : > { %v1237_v23 = vpop.permute.xlu0 %1236 }
 0x631   : > { %v1255_v27 = vsel %vm1254_vm7, %v1253_v26, %v1237_v23 }
 0x639   : > { %v1241_v25 = vpop.permute.xlu1 %1240 }
 0x63a   : > { %v1257_v28 = vsel %vm1256_vm8, %v1255_v27, %v1241_v25 }
 0x641   : > { %v1245_v29 = vpop.permute.xlu0 %1244 }
 0x642   : > { %v1259_v16 = vsel %vm1258_vm9, %v1257_v28, %v1245_v29 }
 0x643   : > { %v1260_v30 = vpack.c.bf16 %v1259_v16, %v1259_v16 }
 0x645   : > { %1636 = vmatmul.mubr.msk.bf16.vlgmr.msra.gmra.mrb[28].mxu0 %vm292_vm0, %v1260_v30 }
 0x718   : > { %v1337_v32 = vpop.f32.mrb[28].mxu0 }
 0x719   : > { %v1338_v33 = vadd.f32 %v1484_v31, %v1337_v32  ;;  %v1637_v62 = vpop.f32.mrb[29].mxu0 }
 0x71a   : > { %v1340_v34 = vpop.f32.mrb[30].mxu0 }
 0x71b   : > { %v1638_v35 = vpop.f32.mrb[31].mxu0  ;;  %1343 = vst.msk [vmem:[%s241_s6] sm:$0xff] %vm292_vm0, %v1338_v33 }
 0x71c   : > { %1875 = shalt.err (!%p1872_p2)
}
 0x71d   : > { %s1876_s5 = scalar_lea.hbm %s2365_s13, 128  ;;  %s1880_s9 = scalar_lea.hbm %s2414_s4, 256 }
 0x71e   : > { %p1877_p13 = scmp.ne.s32.totalorder %s2365_s13, %s1876_s5  ;;  %p1881_p4 = scmp.lt.u32.totalorder %s2365_s13, %s2414_s4 }
 0x71f   : > { %p1882_p7 = scmp.lt.u32.totalorder %s1880_s9, %s1876_s5  ;;  %p1884_p8 = scmp.lt.u32.totalorder %s1876_s5, %s2365_s13 }
 0x720   : > { %p1878_p6 = pnand %p1877_p13, %p2428_p0 }
 0x721   : > { %p1883_p11 = por %p1882_p7, %p1881_p4 }
 0x722   : > { %p1879_p10 = pneg %p1878_p6 }
 0x723   : > { %p1885_p1 = por %p1884_p8, %p1883_p11 }
 0x725   : > { %p1886_p3 = pnand %p1885_p1, %p1879_p10 }
 0x727   : > { %1889 = shalt.err (!%p1886_p3)
}
 0x728   : > { %1649 = dma.vmem_to_hbm [thread:$0]  (%p2428_p0), %s2367_s25, 128, %s2365_s13, %s1345_s19  }
 0x729 PF: > { %s1370_s23 = sand.u32 1, %s1920_s15   ;;  %p2429_p5 = scmp.ne.s32.totalorder %s2419_s22, 0 }
 0x72a   : > { %p2430_p9 = scmp.ge.s32.totalorder %s1932_s18, 2  ;;  %s1371_s30 = scalar_lea.sflag [#allocation4], %s1370_s23 }
 0x72c   : > { %p1663_p12 = pnand %p2430_p9, %p2429_p5 }
 0x72e   : > { %1915 = dma.done.wait (!%p1663_p12), %s1371_s30, 128  }
 0x72f   : > { %1917 = vsyncadd (!%p1663_p12), %s1371_s30, 4294967168  ;;  %p18_p2 = scmp.ge.s32.totalorder %s2095_s11, 4   ;;  %s2431_s15 = smov %s1924_s16 }
 0x730   : > { %s2432_s16 = smov %s1928_s17  ;;  %s2433_s17 = smov %s2104_s14 }
 0x731   : > { %s2434_s18 = smov %s2095_s11  ;;  %20 = sbr.rel (!%p18_p2) target bundleno = 6 (0x6), region = 89 }
 0x738   :  { %1376 = vsyncpa [#allocation3], 1 }
 0x739   :  { %1378 = vsyncpa [#allocation3 + $0x1], 1 }
 0x73a   :  { %1379 = vsyncpa [#allocation6], 1 }
 0x73b   :  { %1380 = vsyncpa [#allocation4], 1 }
 0x73c   :  { %1382 = vsyncpa [#allocation4 + $0x1], 1 }

// kernel: tpu_custom_call.1
= control target key start
LH: loop header
LB: loop body
LE: loop exit
PB: predicated region body
PF: predicated region fallthrough
CT: control target
= control target key end

     0   :  { %9 = vsyncpa [#allocation3], 0  ;;  %s2410_s0 = inlined_call_operand.hbm [shape: bf16[2,8,64], index: 0, kind: input, shape index: {}]   ;;  %s2411_s1 = inlined_call_operand.hbm [shape: bf16[64,192], index: 1, kind: input, shape index: {}]   ;;  %s2412_s2 = inlined_call_operand.hbm [shape: bf16[64,64], index: 2, kind: input, shape index: {}]   ;;  %s2413_s3 = inlined_call_operand.vmem [shape: f32[1,64], index: 3, kind: input, shape index: {}]   ;;  %s2414_s4 = inlined_call_operand.hbm [shape: f32[2,8,64], index: 4, kind: output, shape index: {}]  }
   0x1   :  { %11 = vsyncpa [#allocation3 + $0x1], 0 }
   0x2   :  { %12 = vsyncpa [#allocation6], 0 }
   0x3   :  { %13 = vsyncpa [#allocation4], 0 }
   0x4   :  { %15 = vsyncpa [#allocation4 + $0x1], 0  ;;  %s1985_s15 = smov 0   ;;  %s1987_s16 = smov 0  }
   0x5   :  { %s1989_s17 = smov 0   ;;  %s1991_s18 = smov 0  }
   0x6 LB: > { %s2006_s19 = sadd.s32 4294967295, %s1932_s18   ;;  %s1447_s20 = sadd.s32 4294967294, %s1932_s18   ;;  %s1932_s18 = sphi %s1991_s18, %s2434_s18   ;;  %s1928_s17 = sphi %s1989_s17, %s2433_s17   ;;  %s1924_s16 = sphi %s1987_s16, %s2432_s16   ;;  %s1920_s15 = sphi %s1985_s15, %s2431_s15  }
   0x7   : > { %p41_p0 = scmp.ne.s32.totalorder %s1924_s16, %s1920_s15  ;;  %p2415_p1 = scmp.eq.s32.totalorder %s2006_s19, 0 }
   0x8   : > { %p134_p3 = scmp.eq.s32.totalorder %s1447_s20, 1  ;;  %p1448_p5 = scmp.ge.s32.totalorder %s1932_s18, 1 }
   0x9   : > { %p2015_p4 = por %p2415_p1, %p41_p0  ;;  %p141_p7 = scmp.lt.s32.totalorder %s1932_s18, 3 }
   0xa   : > { %p2020_p6 = por %p134_p3, %p41_p0  ;;  %s1934_s24 = smov [#allocation5]  }
   0xb   : > { %s2418_s21 = scalar_select %p2015_p4, 1, 0 }
   0xc   : > { %s2419_s22 = scalar_select %p2020_p6, 1, 0 }
   0xd   : > { %p2025_p8 = pnand %p1448_p5, %p141_p7  ;;  %s153_s25 = sshll.u32 %s1934_s24, 4  ;;  %s2029_s25 = int_to_ptr.vmem [resolvable:$true] %s153_s25 }
   0xe   : > { %s1935_s27 = smov [#allocation7]   ;;  %s1776_s5 = scalar_lea.hbm %s2411_s1, 1024 }
   0xf   : > { %p1651_p9 = pneg %p2025_p8  ;;  %s166_s28 = sshll.u32 %s1935_s27, 4  ;;  %s2040_s28 = int_to_ptr.vmem [resolvable:$true] %s166_s28 }
  0x10   : > { %p1777_p12 = scmp.ne.s32.totalorder %s2411_s1, %s1776_s5  ;;  %p1783_p5 = scmp.lt.u32.totalorder %s1776_s5, %s2411_s1 }
  0x11   : > { %p2036_p11 = pnand %p1651_p9, %p2415_p1 }
  0x13   : > { %p1778_p13 = pneg %p2036_p11 }
  0x15   : > { %p1779_p0 = pnand %p1778_p13, %p1777_p12 }
  0x17   : > { %p1780_p3 = pneg %p1779_p0 }
  0x19   : > { %p1785_p7 = pnand %p1783_p5, %p1780_p3 }
  0x1b   : > { %1788 = shalt.err (!%p1785_p7)
}
  0x1c   : > { %s1789_s10 = scalar_lea.vmem %s2029_s25, 1024  ;;  %p1797_p2 = scmp.lt.s32.totalorder %s2029_s25, %s2029_s25 }
  0x1d   : > { %p1790_p9 = scmp.ne.s32.totalorder %s2029_s25, %s1789_s10  ;;  %p1798_p12 = scmp.lt.s32.totalorder %s1789_s10, %s1789_s10 }
  0x1f   : > { %p1792_p10 = pnand %p1790_p9, %p1778_p13  ;;  %p1799_p0 = por %p1798_p12, %p1797_p2 }
  0x21   : > { %p1793_p1 = pneg %p1792_p10 }
  0x23   : > { %p1800_p6 = pnand %p1799_p0, %p1793_p1 }
  0x25   : > { %1803 = shalt.err (!%p1800_p6)
}
  0x26   : > { %s1936_s11 = smov 128   ;;  %s1937_s12 = smov 8  }
  0x27   : > { %1654 = dma.hbm_to_vmem [thread:$0]  (!%p2036_p11), %s2411_s1, 1024, %s2029_s25, [#allocation6], %s1936_s11, %s1936_s11, %s1937_s12  }
  0x28   : > { %s1804_s27 = scalar_lea.hbm %s2412_s2, 512 }
  0x29   : > { %p1805_p2 = scmp.ne.s32.totalorder %s2412_s2, %s1804_s27  ;;  %p1811_p10 = scmp.lt.u32.totalorder %s1804_s27, %s2412_s2 }
  0x2b   : > { %p1807_p1 = pnand %p1805_p2, %p1778_p13 }
  0x2d   : > { %p1808_p6 = pneg %p1807_p1 }
  0x2f   : > { %p1813_p3 = pnand %p1811_p10, %p1808_p6 }
  0x31   : > { %1816 = shalt.err (!%p1813_p3)
}
  0x32   : > { %s1817_s25 = scalar_lea.vmem %s2040_s28, 512  ;;  %p1825_p12 = scmp.lt.s32.totalorder %s2040_s28, %s2040_s28 }
  0x33   : > { %p1818_p5 = scmp.ne.s32.totalorder %s2040_s28, %s1817_s25  ;;  %p1826_p0 = scmp.lt.s32.totalorder %s1817_s25, %s1817_s25 }
  0x35   : > { %p1820_p7 = pnand %p1818_p5, %p1778_p13  ;;  %p1827_p2 = por %p1826_p0, %p1825_p12 }
  0x37   : > { %p1821_p9 = pneg %p1820_p7 }
  0x39   : > { %p1828_p1 = pnand %p1827_p2, %p1821_p9 }
  0x3b   : > { %1831 = shalt.err (!%p1828_p1)
}
  0x3c   : > { %s1938_s7 = smov 64   ;;  %s1939_s8 = smov 4  }
  0x3d   : > { %1657 = dma.hbm_to_vmem [thread:$0]  (!%p2036_p11), %s2412_s2, 512, %s2040_s28, [#allocation6], %s1938_s7, %s1938_s7, %s1939_s8  }
  0x3e   : > { %s2095_s11 = sadd.s32 1, %s1932_s18   ;;  %s28_s13 = sadd.s32 1, %s1928_s17 }
  0x3f   : > { %s25_s12 = ssub.s32 %s1932_s18, %s2095_s11  ;;  %p35_p6 = scmp.ne.s32.totalorder %s1928_s17, %s1924_s16 }
  0x40   : > { %p26_p13 = scmp.eq.s32.totalorder %s25_s12, 0  ;;  %p36_p10 = scmp.eq.s32.totalorder %s1932_s18, 0 }
  0x41   : > { %p2422_p5 = scmp.eq.s32.totalorder %s2006_s19, 1  ;;  %p1668_p9 = scmp.lt.s32.totalorder %s1932_s18, 2 }
  0x42   : > { %s2104_s14 = scalar_select %p26_p13, %s1928_s17, %s28_s13  }
  0x43   : > { %p37_p3 = por %p36_p10, %p35_p6  ;;  %p2108_p7 = por %p2422_p5, %p35_p6 }
  0x44   : > { %s183_s26 = sand.u32 1, %s1928_s17   ;;  %s1453_s28 = sshll.u32 %s1932_s18, 6 }
  0x45   : > { %s2423_s20 = scalar_select %p2108_p7, 1, 0 }
  0x46   : > { %s1452_s24 = sshll.u32 %s183_s26, 2  ;;  %s2118_s30 = scalar_lea.hbm %s2410_s0, %s1453_s28 }
  0x47   : > { %s187_s5 = scalar_lea.vmem [#allocation2], %s1452_s24  ;;  %p2122_p11 = pnand %p1668_p9, %p37_p3 }
  0x48   : > { %s194_s6 = sshll.u32 %s187_s5, 4  ;;  %s184_s7 = scalar_lea.sflag [#allocation3], %s183_s26  ;;  %s2120_s6 = int_to_ptr.vmem [resolvable:$true] %s194_s6 }
  0x49   : > { %s1832_s8 = scalar_lea.hbm %s2118_s30, 64  ;;  %p1834_p0 = pneg %p2122_p11 }
  0x4a   : > { %p1833_p12 = scmp.ne.s32.totalorder %s2118_s30, %s1832_s8  ;;  %s1837_s12 = scalar_lea.hbm %s2410_s0, 128 }
  0x4b   : > { %p1838_p13 = scmp.lt.u32.totalorder %s2118_s30, %s2410_s0  ;;  %p1839_p6 = scmp.lt.u32.totalorder %s1837_s12, %s1832_s8 }
  0x4c   : > { %p1835_p2 = pnand %p1834_p0, %p1833_p12  ;;  %p1841_p3 = scmp.lt.u32.totalorder %s1832_s8, %s2118_s30 }
  0x4d   : > { %p1840_p10 = por %p1839_p6, %p1838_p13 }
  0x4e   : > { %p1836_p1 = pneg %p1835_p2 }
  0x4f   : > { %p1842_p5 = por %p1841_p3, %p1840_p10 }
  0x51   : > { %p1843_p9 = pnand %p1842_p5, %p1836_p1 }
  0x53   : > { %1846 = shalt.err (!%p1843_p9)
}
  0x54   : > { %s1847_s26 = scalar_lea.vmem %s2120_s6, 64  ;;  %s1940_s28 = smov [#allocation2]  }
  0x55   : > { %p1848_p12 = scmp.ne.s32.totalorder %s2120_s6, %s1847_s26  ;;  %s1852_s27 = sshll.u32 %s1940_s28, 4  ;;  %s1853_s27 = int_to_ptr.vmem [resolvable:$false] %s1852_s27 }
  0x56   : > { %s1854_s29 = scalar_lea.vmem %s1853_s27, 128  ;;  %p1855_p4 = scmp.lt.s32.totalorder %s2120_s6, %s1853_s27 }
  0x57   : > { %p1850_p2 = pnand %p1848_p12, %p1834_p0  ;;  %p1856_p13 = scmp.lt.s32.totalorder %s1854_s29, %s1847_s26 }
  0x59   : > { %p1851_p7 = pneg %p1850_p2  ;;  %p1857_p6 = por %p1856_p13, %p1855_p4 }
  0x5b   : > { %p1858_p10 = pnand %p1857_p6, %p1851_p7 }
  0x5d   : > { %1861 = shalt.err (!%p1858_p10)
}
  0x5e   : > { %1661 = dma.hbm_to_vmem [thread:$0]  (!%p2122_p11), %s2118_s30, 64, %s2120_s6, %s184_s7  }
  0x5f   : > { %203 = sbr.rel (%p2025_p8) target bundleno = 1833 (0x729), region = 36  ;;  %s2154_s5 = sand.u32 (!%p2025_p8), 1, %s1924_s16  }
  0x60   : > { %s1455_s8 = sshll.u32 (!%p2025_p8), %s2154_s5, 2  ;;  %s206_s9 = scalar_lea.sflag (!%p2025_p8), [#allocation3], %s2154_s5 }
  0x61   : > { %s209_s10 = scalar_lea.vmem (!%p2025_p8), [#allocation2], %s1455_s8  ;;  %p2425_p4 = scmp.ne.s32.totalorder (!%p2025_p8), %s2418_s21, 0 }
  0x66   : > { %1907 = dma.done.wait (%p2425_p4), %s206_s9, 64  }
  0x67   : > { %1909 = vsyncadd (%p2425_p4), %s206_s9, 4294967232  ;;  %p2426_p7 = scmp.eq.s32.totalorder %s2006_s19, 0 }
  0x69   : > { %1911 = dma.done.wait (%p2426_p7), [#allocation6], 1536   ;;  %p2427_p11 = pmov %p2426_p7 }
  0x6a   : > { %v1941_v0 = vmov 0   ;;  %v1728_v1 = vld [vmem:[#allocation5 + $0x4] ss:$8 sps:$4 sm:$0xff]   ;;  %v1730_v2 = vld [vmem:[#allocation5] ss:$8 sps:$4 sm:$0xff]   ;;  %vm292_vm0 = vcmask 523264  }
  0x6b   : > { %1913 = vsyncadd (%p2427_p11), [#allocation6], 4294965760  ;;  %328 = vmatprep.mubr.bf16.mxu0 %v1941_v0  ;;  %296 = vmatprep.subr.bf16.mxu0 %v1728_v1  ;;  %v1731_v3 = vld [vmem:[#allocation5 + $0x14] ss:$8 sps:$4 sm:$0xff]   ;;  %v1733_v4 = vld [vmem:[#allocation5 + $0x10] ss:$8 sps:$4 sm:$0xff]  }
  0x6c   : > { %297 = vmatpush1.bf16.msra.mxu0 %v1730_v2  ;;  %v1734_v5 = vld [vmem:[#allocation5 + $0x24] ss:$8 sps:$4 sm:$0xff]   ;;  %v1736_v6 = vld [vmem:[#allocation5 + $0x20] ss:$8 sps:$4 sm:$0xff]   ;;  %v1737_v7 = vld [vmem:[#allocation5 + $0x34] ss:$8 sps:$4 sm:$0xff]  }
  0x6d   : > { %298 = vmatprep.subr.bf16.mxu0 %v1731_v3  ;;  %v1739_v8 = vld [vmem:[#allocation5 + $0x30] ss:$8 sps:$4 sm:$0xff]   ;;  %v1942_v10 = vmov 0.0   ;;  %vm1943_vm1 = vmmov 0   ;;  %s1944_s21 = smov 56   ;;  %s1945_s23 = smov 64  }
  0x6e   : > { %v243_v9 = vld [vmem:[%s209_s10] sm:$0xf]  ;;  %1531 = vmatprep.subr.bf16.mxu1 %v1942_v10  ;;  %1533 = vmatprep.mubr.msk.bf16.mxu1 %vm1943_vm1, %v1942_v10  ;;  %s1946_s30 = smov 120   ;;  %s1947_s6 = smov 48   ;;  %vm342_vm2 = vcmask 64512   ;;  %vm402_vm3 = vcmask 1043456  }
  0x6f   : > { %s1948_s25 = smov 112   ;;  %s1949_s7 = smov 40   ;;  %vm1248_vm4 = vcmask 130048   ;;  %vm1250_vm5 = vcmask 195584   ;;  %vm1252_vm6 = vcmask 261120   ;;  %vm1254_vm7 = vcmask 326656  }
  0x70   : > { %299 = vmatpush1.bf16.msra.mxu0 %v1733_v4  ;;  %s1950_s12 = smov 104   ;;  %s1951_s13 = smov 32   ;;  %vm1256_vm8 = vcmask 392192   ;;  %vm1258_vm9 = vcmask 457728  }
  0x71   : > { %300 = vmatprep.subr.bf16.mxu0 %v1734_v5  ;;  %s1952_s24 = smov 96   ;;  %s1953_s26 = smov 24  }
  0x72   : > { %s1954_s28 = smov 16   ;;  %s1955_s27 = smov 80  }
  0x73   : > { %s1956_s29 = smov 8   ;;  %s1957_s8 = smov 72  }
  0x74   : > { %301 = vmatpush1.bf16.msra.mxu0 %v1736_v6  ;;  %s1958_s9 = smov 88   ;;  %s1458_s10 = sshll.u32 %s2154_s5, 3 }
  0x75   : > { %302 = vmatprep.subr.bf16.mxu0 %v1737_v7  ;;  %p2428_p0 = scmp.ne.s32.totalorder %s2423_s20, 0 }
  0x78   : > { %303 = vmatpush1.bf16.msra.mxu0 %v1739_v8 }
  0x79   : > { %1555 = vmatprep.subr.bf16.mxu0 %v1942_v10 }
  0x7b   : > { %1467 = vmatmul.mubr.msk.bf16.vlgmr.msra.gmra.mrb[0].mxu0 %vm292_vm0, %v243_v9 }
  0x7c   : > { %1557 = vmatprep.mubr.msk.bf16.mxu0 %vm1943_vm1, %v1942_v10 }
 0x14e   : > { %v330_v11 = vpop.f32.mrb[0].mxu0 }
 0x14f   : > { %v2173_v12 = vpack.c.bf16 %v330_v11, %v330_v11  ;;  %v332_v13 = vpop.f32.mrb[1].mxu0 }
 0x150   : > { %v334_v14 = vpop.f32.mrb[2].mxu0  ;;  %v2208_v20 = vpack.c.bf16 %v332_v13, %v332_v13 }
 0x151   : > { %450 = vrot.lane.b32.xlu1 %v2173_v12, %s1944_s21  ;;  %340 = vrot.lane.b32.xlu0 %v2173_v12, %s1945_s23  ;;  %v335_v15 = vpop.f32.mrb[3].mxu0 }
 0x152   : > { %v404_v23 = vsel %vm402_vm3, %v2208_v20, 0 }
 0x155   : > { %448 = vrot.lane.b32.xlu1 %v2173_v12, %s1946_s30 }
 0x159   : > { %561 = vrot.lane.b32.xlu1 %v2173_v12, %s1947_s6 }
 0x15d   : > { %559 = vrot.lane.b32.xlu1 %v2173_v12, %s1948_s25 }
 0x161   : > { %671 = vrot.lane.b32.xlu1 %v2173_v12, %s1949_s7 }
 0x165   : > { %669 = vrot.lane.b32.xlu1 %v2173_v12, %s1950_s12 }
 0x169   : > { %781 = vrot.lane.b32.xlu1 %v2173_v12, %s1951_s13 }
 0x16d   : > { %779 = vrot.lane.b32.xlu1 %v2173_v12, %s1952_s24 }
 0x171   : > { %891 = vrot.lane.b32.xlu1 %v2173_v12, %s1953_s26 }
 0x175   : > { %1001 = vrot.lane.b32.xlu1 %v2173_v12, %s1954_s28 }
 0x179   : > { %999 = vrot.lane.b32.xlu1 %v2173_v12, %s1955_s27 }
 0x17d   : > { %1111 = vrot.lane.b32.xlu1 %v2173_v12, %s1956_s29 }
 0x181   : > { %1109 = vrot.lane.b32.xlu1 %v2173_v12, %s1957_s8 }
 0x1c3   : > { %v2202_v16 = vpop.permute.xlu1 %450  ;;  %v341_v17 = vpop.permute.xlu0 %340 }
 0x1c4   : > { %v347_v18 = vsel %vm342_vm2, %v341_v17, 0  ;;  %v456_v0 = vsel %vm342_vm2, %v2202_v16, 0 }
 0x1c5   : > { %1532 = vmatpush3.bf16.xpose.msra.mxu1 %v347_v18 }
 0x1c6   : > { %1537 = vmatprep.subr.bf16.mxu1 %v1942_v10 }
 0x1c7   : > { %v2206_v19 = vpop.permute.xlu1 %448 }
 0x1cb   : > { %v562_v21 = vpop.permute.xlu1 %561 }
 0x1cc   : > { %v567_v22 = vsel %vm342_vm2, %v562_v21, 0  ;;  %1534 = vmatmul.mubr.msk.bf16.vlgmr.msra.gmra.mrb[0].mxu1 %vm342_vm2, %v2173_v12 }
 0x1cd   : > { %1538 = vmatpush3.bf16.msra.mxu1 %v404_v23  ;;  %1556 = vmatpush3.bf16.xpose.msra.mxu0 %v567_v22 }
 0x1ce   : > { %1567 = vmatprep.subr.bf16.mxu0 %v1942_v10  ;;  %1539 = vmatprep.mubr.msk.bf16.mxu1 %vm1943_vm1, %v1942_v10 }
 0x1cf   : > { %v560_v24 = vpop.permute.xlu1 %559  ;;  %1543 = vmatprep.subr.bf16.mxu1 %v1942_v10 }
 0x1d3   : > { %v672_v25 = vpop.permute.xlu1 %671 }
 0x1d4   : > { %v677_v26 = vsel %vm342_vm2, %v672_v25, 0  ;;  %1558 = vmatmul.mubr.msk.bf16.vlgmr.msra.gmra.mrb[4].mxu0 %vm342_vm2, %v560_v24 }
 0x1d5   : > { %1568 = vmatpush3.bf16.xpose.msra.mxu0 %v677_v26  ;;  %1569 = vmatprep.mubr.msk.bf16.mxu0 %vm1943_vm1, %v1942_v10 }
 0x1d6   : > { %1579 = vmatprep.subr.bf16.mxu0 %v1942_v10 }
 0x1d7   : > { %v670_v27 = vpop.permute.xlu1 %669 }
 0x1db   : > { %v782_v28 = vpop.permute.xlu1 %781 }
 0x1dc   : > { %v787_v29 = vsel %vm342_vm2, %v782_v28, 0  ;;  %1570 = vmatmul.mubr.msk.bf16.vlgmr.msra.gmra.mrb[8].mxu0 %vm342_vm2, %v670_v27 }
 0x1dd   : > { %1580 = vmatpush3.bf16.xpose.msra.mxu0 %v787_v29  ;;  %1581 = vmatprep.mubr.msk.bf16.mxu0 %vm1943_vm1, %v1942_v10 }
 0x1de   : > { %1591 = vmatprep.subr.bf16.mxu0 %v1942_v10 }
 0x1df   : > { %v780_v30 = vpop.permute.xlu1 %779 }
 0x1e3   : > { %v892_v31 = vpop.permute.xlu1 %891 }
 0x1e4   : > { %v897_v32 = vsel %vm342_vm2, %v892_v31, 0  ;;  %1582 = vmatmul.mubr.msk.bf16.vlgmr.msra.gmra.mrb[12].mxu0 %vm342_vm2, %v780_v30 }
 0x1e5   : > { %1592 = vmatpush3.bf16.xpose.msra.mxu0 %v897_v32  ;;  %1593 = vmatprep.mubr.msk.bf16.mxu0 %vm1943_vm1, %v1942_v10 }
 0x1e6   : > { %1603 = vmatprep.subr.bf16.mxu0 %v1942_v10 }
 0x1e7   : > { %v1002_v53 = vpop.permute.xlu1 %1001 }
 0x1e8   : > { %v1007_v59 = vsel %vm342_vm2, %v1002_v53, 0 }
 0x1eb   : > { %v1000_v57 = vpop.permute.xlu1 %999 }
 0x1ef   : > { %v1112_v60 = vpop.permute.xlu1 %1111 }
 0x1f0   : > { %v1117_v61 = vsel %vm342_vm2, %v1112_v60, 0 }
 0x1f3   : > { %v1110_v1 = vpop.permute.xlu1 %1109 }
 0x29f   : > { %v383_v33 = vpop.f32.mrb[0].mxu1 }
 0x2a0   : > { %v1535_v34 = vpop.f32.mrb[1].mxu1  ;;  %v389_v35 = vsel %vm342_vm2, %v383_v33, -inf }
 0x2a1   : > { %390 = vmax.xlane.f32.xlu0 %v389_v35  ;;  %v386_v36 = vpop.f32.mrb[2].mxu1 }
 0x2a2   : > { %v1536_v37 = vpop.f32.mrb[3].mxu1 }
 0x2a7   : > { %v2235_v38 = vpop.f32.mrb[4].mxu0 }
 0x2a8   : > { %v1559_v39 = vpop.f32.mrb[5].mxu0  ;;  %v609_v51 = vsel %vm342_vm2, %v2235_v38, -inf }
 0x2a9   : > { %v606_v40 = vpop.f32.mrb[6].mxu0 }
 0x2aa   : > { %v1560_v41 = vpop.f32.mrb[7].mxu0 }
 0x2af   : > { %v2237_v42 = vpop.f32.mrb[8].mxu0 }
 0x2b0   : > { %v1571_v43 = vpop.f32.mrb[9].mxu0  ;;  %v719_v52 = vsel %vm342_vm2, %v2237_v42, -inf }
 0x2b1   : > { %v716_v44 = vpop.f32.mrb[10].mxu0 }
 0x2b2   : > { %v1572_v45 = vpop.f32.mrb[11].mxu0 }
 0x2b7   : > { %889 = vrot.lane.b32.xlu0 %v2173_v12, %s1958_s9  ;;  %v2241_v46 = vpop.f32.mrb[12].mxu0 }
 0x2b8   : > { %v1583_v47 = vpop.f32.mrb[13].mxu0  ;;  %v829_v48 = vsel %vm342_vm2, %v2241_v46, -inf }
 0x2b9   : > { %830 = vmax.xlane.f32.xlu1 %v829_v48  ;;  %v826_v49 = vpop.f32.mrb[14].mxu0 }
 0x2ba   : > { %v1584_v50 = vpop.f32.mrb[15].mxu0 }
 0x2bb   : > { %509 = vrot.lane.b32.xlu0 %v2208_v20, %s1946_s30  ;;  %s1491_s30 = sshll.u32 %s2006_s19, 7  ;;  %s1345_s19 = scalar_lea.sflag [#allocation4], %s2154_s5 }
 0x2da   : > { %610 = vmax.xlane.f32.xlu0 %v609_v51 }
 0x2de   : > { %720 = vmax.xlane.f32.xlu0 %v719_v52 }
 0x2f4   : > { %729 = vrot.lane.b32.xlu0 %v2208_v20, %s1950_s12 }
 0x32e   : > { %v391_v54 = vpop.xlane.xlu0 %390 }
 0x32f   : > { %v392_v55 = vsub.f32 %v383_v33, %v391_v54 }
 0x331   : > { %v393_v56 = vmul.f32 1.442695, %v392_v55 }
 0x332   : > { %v890_v58 = vpop.permute.xlu0 %889 }
 0x333   : > { %1744 = vpow2.f32 %v393_v56  ;;  %1594 = vmatmul.mubr.msk.bf16.vlgmr.msra.gmra.mrb[16].mxu0 %vm342_vm2, %v890_v58 }
 0x334   : > { %1604 = vmatpush3.bf16.xpose.msra.mxu0 %v1007_v59  ;;  %1605 = vmatprep.mubr.msk.bf16.mxu0 %vm1943_vm1, %v1942_v10 }
 0x335   : > { %1615 = vmatprep.subr.bf16.mxu0 %v1942_v10 }
 0x336   : > { %v510_v2 = vpop.permute.xlu0 %509 }
 0x337   : > { %v515_v3 = vsel %vm402_vm3, %v510_v2, 0 }
 0x33b   : > { %1606 = vmatmul.mubr.msk.bf16.vlgmr.msra.gmra.mrb[20].mxu0 %vm342_vm2, %v1000_v57 }
 0x33c   : > { %1616 = vmatpush3.bf16.xpose.msra.mxu0 %v1117_v61  ;;  %1617 = vmatprep.mubr.msk.bf16.mxu0 %vm1943_vm1, %v1942_v10 }
 0x33d   : > { %v2262_v62 = vpop.eup %1744  ;;  %1627 = vmatprep.subr.bf16.mxu0 %v1942_v10 }
 0x33e   : > { %v398_v63 = vpack.c.bf16 %v2262_v62, %v2262_v62 }
 0x340   : > { %1540 = vmatmul.mubr.msk.bf16.vlgmr.msra.gmra.mrb[4].mxu1 %vm342_vm2, %v398_v63 }
 0x341   : > { %1544 = vmatpush3.bf16.xpose.msra.mxu1 %v456_v0  ;;  %1545 = vmatprep.mubr.msk.bf16.mxu1 %vm1943_vm1, %v1942_v10 }
 0x342   : > { %1549 = vmatprep.subr.bf16.mxu1 %v1942_v10 }
 0x343   : > { %1618 = vmatmul.mubr.msk.bf16.vlgmr.msra.gmra.mrb[24].mxu0 %vm342_vm2, %v1110_v1 }
 0x344   : > { %1635 = vmatprep.mubr.msk.bf16.mxu0 %vm1943_vm1, %v1942_v10 }
 0x346   : > { %v831_v33 = vpop.xlane.xlu1 %830 }
 0x347   : > { %v832_v34 = vsub.f32 %v2241_v46, %v831_v33 }
 0x348   : > { %1546 = vmatmul.mubr.msk.bf16.vlgmr.msra.gmra.mrb[8].mxu1 %vm342_vm2, %v2206_v19 }
 0x349   : > { %1550 = vmatpush3.bf16.msra.mxu1 %v515_v3  ;;  %1551 = vmatprep.mubr.msk.bf16.mxu1 %vm1943_vm1, %v1942_v10  ;;  %v833_v36 = vmul.f32 1.442695, %v832_v34 }
 0x34a   : > { %1561 = vmatprep.subr.bf16.mxu1 %v1942_v10 }
 0x367   : > { %v611_v4 = vpop.xlane.xlu0 %610 }
 0x368   : > { %v612_v5 = vsub.f32 %v2235_v38, %v611_v4 }
 0x36b   : > { %v721_v31 = vpop.xlane.xlu0 %720 }
 0x36c   : > { %v722_v32 = vsub.f32 %v2237_v42, %v721_v31  ;;  %v613_v42 = vmul.f32 1.442695, %v612_v5 }
 0x36e   : > { %v723_v35 = vmul.f32 1.442695, %v722_v32 }
 0x36f   : > { %v730_v45 = vpop.permute.xlu0 %729 }
 0x370   : > { %1746 = vpow2.f32 %v723_v35  ;;  %v735_v1 = vsel %vm402_vm3, %v730_v45, 0 }
 0x371   : > { %1748 = vpow2.f32 %v833_v36 }
 0x372   : > { %1750 = vpow2.f32 %v613_v42 }
 0x37a   : > { %v1747_v37 = vpop.eup %1746 }
 0x37b   : > { %v725_v38 = vsel %vm342_vm2, %v1747_v37, 0.0  ;;  %v1749_v39 = vpop.eup %1748  ;;  %v728_v3 = vpack.c.bf16 %v1747_v37, %v1747_v37 }
 0x37c   : > { %v835_v40 = vsel %vm342_vm2, %v1749_v39, 0.0  ;;  %v1751_v43 = vpop.eup %1750  ;;  %v838_v5 = vpack.c.bf16 %v1749_v39, %v1749_v39 }
 0x37d   : > { %v615_v44 = vsel %vm342_vm2, %v1751_v43, 0.0  ;;  %v618_v0 = vpack.c.bf16 %v1751_v43, %v1751_v43 }
 0x406   : > { %v933_v6 = vpop.f32.mrb[16].mxu0 }
 0x407   : > { %v1595_v7 = vpop.f32.mrb[17].mxu0  ;;  %v939_v8 = vsel %vm342_vm2, %v933_v6, -inf }
 0x408   : > { %940 = vmax.xlane.f32.xlu1 %v939_v8  ;;  %v936_v9 = vpop.f32.mrb[18].mxu0 }
 0x409   : > { %v1596_v11 = vpop.f32.mrb[19].mxu0 }
 0x40e   : > { %v2284_v12 = vpop.f32.mrb[20].mxu0 }
 0x40f   : > { %v1607_v13 = vpop.f32.mrb[21].mxu0  ;;  %v1049_v41 = vsel %vm342_vm2, %v2284_v12, -inf }
 0x410   : > { %v1046_v14 = vpop.f32.mrb[22].mxu0 }
 0x411   : > { %v1608_v15 = vpop.f32.mrb[23].mxu0 }
 0x413   : > { %v2286_v16 = vpop.f32.mrb[4].mxu1 }
 0x414   : > { %v1541_v17 = vpop.f32.mrb[5].mxu1 }
 0x415   : > { %v443_v18 = vpop.f32.mrb[6].mxu1 }
 0x416   : > { %v1542_v19 = vpop.f32.mrb[7].mxu1  ;;  %v1153_v21 = vpop.f32.mrb[24].mxu0 }
 0x417   : > { %v1619_v22 = vpop.f32.mrb[25].mxu0  ;;  %v1159_v23 = vsel %vm342_vm2, %v1153_v21, -inf }
 0x418   : > { %1160 = vmax.xlane.f32.xlu0 %v1159_v23  ;;  %v1156_v24 = vpop.f32.mrb[26].mxu0  ;;  %v395_v22 = vsel %vm342_vm2, %v2262_v62, 0.0 }
 0x419   : > { %v1620_v25 = vpop.f32.mrb[27].mxu0 }
 0x41b   : > { %v492_v26 = vpop.f32.mrb[8].mxu1 }
 0x41c   : > { %v1547_v27 = vpop.f32.mrb[9].mxu1  ;;  %v498_v28 = vsel %vm342_vm2, %v492_v26, -inf }
 0x41d   : > { %v495_v29 = vpop.f32.mrb[10].mxu1  ;;  %499 = vmax.xlane.f32.xlu1 %v498_v28 }
 0x41e   : > { %v1548_v30 = vpop.f32.mrb[11].mxu1 }
 0x42e   : > { %619 = vrot.lane.b32.xlu1 %v2208_v20, %s1948_s25  ;;  %839 = vrot.lane.b32.xlu0 %v2208_v20, %s1952_s24 }
 0x44d   : > { %726 = vadd.xlane.f32.xlu0 %v725_v38 }
 0x451   : > { %836 = vadd.xlane.f32.xlu0 %v835_v40 }
 0x452   : > { %1050 = vmax.xlane.f32.xlu1 %v1049_v41 }
 0x463   : > { %949 = vrot.lane.b32.xlu1 %v2208_v20, %s1958_s9 }
 0x467   : > { %1059 = vrot.lane.b32.xlu1 %v2208_v20, %s1955_s27 }
 0x46b   : > { %1169 = vrot.lane.b32.xlu1 %v2208_v20, %s1957_s8 }
 0x48f   : > { %616 = vadd.xlane.f32.xlu1 %v615_v44 }
 0x495   : > { %v941_v46 = vpop.xlane.xlu1 %940 }
 0x496   : > { %v942_v47 = vsub.f32 %v933_v6, %v941_v46 }
 0x498   : > { %v943_v51 = vmul.f32 1.442695, %v942_v47 }
 0x4a5   : > { %v1161_v48 = vpop.xlane.xlu0 %1160 }
 0x4a6   : > { %v1162_v52 = vsub.f32 %v1153_v21, %v1161_v48 }
 0x4a8   : > { %v1163_v54 = vmul.f32 1.442695, %v1162_v52  ;;  %v1740_v52 = vld [vmem:[#allocation7] sm:$0xff]  }
 0x4a9   : > { %v840_v2 = vpop.permute.xlu0 %839  ;;  %1628 = vmatpush3.bf16.msra.mxu0 %v1740_v52 }
 0x4aa   : > { %v500_v49 = vpop.xlane.xlu1 %499  ;;  %v845_v4 = vsel %vm402_vm3, %v840_v2, 0  ;;  %1629 = vmatprep.subr.bf16.mxu0 %v1942_v10 }
 0x4ab   : > { %v501_v50 = vsub.f32 %v492_v26, %v500_v49 }
 0x4ad   : > { %v502_v53 = vmul.f32 1.442695, %v501_v50 }
 0x4ae   : > { %v620_v55 = vpop.permute.xlu1 %619 }
 0x4af   : > { %1752 = vpow2.f32 %v502_v53  ;;  %v625_v59 = vsel %vm402_vm3, %v620_v55, 0 }
 0x4b0   : > { %1754 = vpow2.f32 %v943_v51 }
 0x4b1   : > { %1756 = vpow2.f32 %v1163_v54  ;;  %v1741_v54 = vld [vmem:[#allocation7 + $0x8] sm:$0xff]  }
 0x4b2   : > { %1630 = vmatpush3.bf16.msra.mxu0 %v1741_v54 }
 0x4b3   : > { %1631 = vmatprep.subr.bf16.mxu0 %v1942_v10 }
 0x4b9   : > { %v1753_v20 = vpop.eup %1752 }
 0x4ba   : > { %v504_v56 = vsel %vm342_vm2, %v1753_v20, 0.0  ;;  %v507_v57 = vpack.c.bf16 %v1753_v20, %v1753_v20  ;;  %v1755_v58 = vpop.eup %1754 }
 0x4bb   : > { %505 = vadd.xlane.f32.xlu0 %v504_v56  ;;  %v945_v60 = vsel %vm342_vm2, %v1755_v58, 0.0  ;;  %v1757_v61 = vpop.eup %1756  ;;  %v948_v13 = vpack.c.bf16 %v1755_v58, %v1755_v58  ;;  %v1742_v56 = vld [vmem:[#allocation7 + $0x10] sm:$0xff]  }
 0x4bc   : > { %1552 = vmatmul.mubr.msk.bf16.vlgmr.msra.gmra.mrb[12].mxu1 %vm342_vm2, %v507_v57  ;;  %v1165_v63 = vsel %vm342_vm2, %v1757_v61, 0.0  ;;  %v1168_v23 = vpack.c.bf16 %v1757_v61, %v1757_v61  ;;  %1632 = vmatpush3.bf16.msra.mxu0 %v1742_v56 }
 0x4bd   : > { %1562 = vmatpush3.bf16.msra.mxu1 %v625_v59  ;;  %1563 = vmatprep.mubr.msk.bf16.mxu1 %vm1943_vm1, %v1942_v10 }
 0x4be   : > { %1573 = vmatprep.subr.bf16.mxu1 %v1942_v10  ;;  %1633 = vmatprep.subr.bf16.mxu0 %v1942_v10 }
 0x4bf   : > { %946 = vadd.xlane.f32.xlu0 %v945_v60 }
 0x4c3   : > { %1166 = vadd.xlane.f32.xlu0 %v1165_v63  ;;  %v1743_v63 = vld [vmem:[#allocation7 + $0x18] sm:$0xff]  }
 0x4c4   : > { %1564 = vmatmul.mubr.msk.bf16.vlgmr.msra.gmra.mrb[16].mxu1 %vm342_vm2, %v618_v0  ;;  %1634 = vmatpush3.bf16.msra.mxu0 %v1743_v63 }
 0x4c5   : > { %1574 = vmatpush3.bf16.msra.mxu1 %v735_v1  ;;  %1575 = vmatprep.mubr.msk.bf16.mxu1 %vm1943_vm1, %v1942_v10 }
 0x4c6   : > { %1585 = vmatprep.subr.bf16.mxu1 %v1942_v10 }
 0x4cc   : > { %1576 = vmatmul.mubr.msk.bf16.vlgmr.msra.gmra.mrb[20].mxu1 %vm342_vm2, %v728_v3 }
 0x4cd   : > { %1586 = vmatpush3.bf16.msra.mxu1 %v845_v4  ;;  %1587 = vmatprep.mubr.msk.bf16.mxu1 %vm1943_vm1, %v1942_v10 }
 0x4ce   : > { %1597 = vmatprep.subr.bf16.mxu1 %v1942_v10 }
 0x4d4   : > { %1588 = vmatmul.mubr.msk.bf16.vlgmr.msra.gmra.mrb[24].mxu1 %vm342_vm2, %v838_v5 }
 0x4d5   : > { %1599 = vmatprep.mubr.msk.bf16.mxu1 %vm1943_vm1, %v1942_v10 }
 0x4da   : > { %v727_v24 = vpop.xlane.xlu0 %726 }
 0x4de   : > { %v837_v25 = vpop.xlane.xlu0 %836 }
 0x4df   : > { %v1051_v6 = vpop.xlane.xlu1 %1050 }
 0x4e0   : > { %v1052_v7 = vsub.f32 %v2284_v12, %v1051_v6 }
 0x4e2   : > { %v1053_v8 = vmul.f32 1.442695, %v1052_v7 }
 0x4e3   : > { %v950_v9 = vpop.permute.xlu1 %949 }
 0x4e4   : > { %1758 = vpow2.f32 %v1053_v8  ;;  %v955_v11 = vsel %vm402_vm3, %v950_v9, 0 }
 0x4e5   : > { %1598 = vmatpush3.bf16.msra.mxu1 %v955_v11 }
 0x4e6   : > { %1609 = vmatprep.subr.bf16.mxu1 %v1942_v10 }
 0x4e7   : > { %v1060_v14 = vpop.permute.xlu1 %1059 }
 0x4e8   : > { %v1065_v15 = vsel %vm402_vm3, %v1060_v14, 0  ;;  %1600 = vmatmul.mubr.msk.bf16.vlgmr.msra.gmra.mrb[28].mxu1 %vm342_vm2, %v948_v13 }
 0x4e9   : > { %1610 = vmatpush3.bf16.msra.mxu1 %v1065_v15  ;;  %1611 = vmatprep.mubr.msk.bf16.mxu1 %vm1943_vm1, %v1942_v10 }
 0x4ea   : > { %1621 = vmatprep.subr.bf16.mxu1 %v1942_v10 }
 0x4eb   : > { %v1170_v17 = vpop.permute.xlu1 %1169 }
 0x4ec   : > { %v1175_v21 = vsel %vm402_vm3, %v1170_v17, 0 }
 0x4ee   : > { %v1759_v12 = vpop.eup %1758 }
 0x4ef   : > { %v1055_v18 = vsel %vm342_vm2, %v1759_v12, 0.0  ;;  %v1058_v19 = vpack.c.bf16 %v1759_v12, %v1759_v12 }
 0x4f0   : > { %1056 = vadd.xlane.f32.xlu1 %v1055_v18 }
 0x4f1   : > { %1612 = vmatmul.mubr.msk.bf16.vlgmr.msra.gmra.mrb[32].mxu1 %vm342_vm2, %v1058_v19 }
 0x4f2   : > { %1622 = vmatpush3.bf16.msra.mxu1 %v1175_v21  ;;  %1623 = vmatprep.mubr.msk.bf16.mxu1 %vm1943_vm1, %v1942_v10 }
 0x4f4   : > { %396 = vadd.xlane.f32.xlu1 %v395_v22 }
 0x4f9   : > { %1624 = vmatmul.mubr.msk.bf16.vlgmr.msra.gmra.mrb[36].mxu1 %vm342_vm2, %v1168_v23 }
 0x51c   : > { %v617_v27 = vpop.xlane.xlu1 %616 }
 0x548   : > { %v506_v26 = vpop.xlane.xlu0 %505 }
 0x549   : > { %1760 = vrcp.f32 %v506_v26 }
 0x54a   : > { %1762 = vrcp.f32 %v617_v27 }
 0x54b   : > { %1764 = vrcp.f32 %v727_v24 }
 0x54c   : > { %1766 = vrcp.f32 %v837_v25  ;;  %v947_v51 = vpop.xlane.xlu0 %946 }
 0x54d   : > { %1768 = vrcp.f32 %v947_v51 }
 0x550   : > { %v1167_v61 = vpop.xlane.xlu0 %1166 }
 0x553   : > { %v1761_v28 = vpop.eup %1760 }
 0x554   : > { %v1763_v62 = vpop.eup %1762 }
 0x555   : > { %v1765_v39 = vpop.eup %1764 }
 0x556   : > { %v1767_v45 = vpop.eup %1766 }
 0x557   : > { %v1769_v20 = vpop.eup %1768 }
 0x57d   : > { %v1057_v53 = vpop.xlane.xlu1 %1056 }
 0x57e   : > { %1770 = vrcp.f32 %v1057_v53 }
 0x57f   : > { %1772 = vrcp.f32 %v1167_v61 }
 0x581   : > { %v397_v10 = vpop.xlane.xlu1 %396 }
 0x582   : > { %1774 = vrcp.f32 %v397_v10 }
 0x588   : > { %v1771_v0 = vpop.eup %1770 }
 0x589   : > { %v1773_v6 = vpop.eup %1772 }
 0x58c   : > { %v1775_v12 = vpop.eup %1774 }
 0x58d   : > { %v447_v18 = vmul.f32 %v1775_v12, %v2286_v16 }
 0x58f   : > { %v551_v29 = vpop.f32.mrb[12].mxu1 }
 0x590   : > { %v558_v30 = vmul.f32 %v1761_v28, %v551_v29  ;;  %v1553_v31 = vpop.f32.mrb[13].mxu1 }
 0x591   : > { %v554_v32 = vpop.f32.mrb[14].mxu1  ;;  %v1484_v31 = vld [vmem:[%s2413_s3] ss:$0 sm:$0xff] }
 0x592   : > { %v1554_v33 = vpop.f32.mrb[15].mxu1  ;;  %1220 = vrot.lane.b32.xlu0 %v558_v30, %s1956_s29 }
 0x597   : > { %v661_v34 = vpop.f32.mrb[16].mxu1 }
 0x598   : > { %v668_v35 = vmul.f32 %v1763_v62, %v661_v34  ;;  %v1565_v36 = vpop.f32.mrb[17].mxu1 }
 0x599   : > { %v664_v37 = vpop.f32.mrb[18].mxu1 }
 0x59a   : > { %v1566_v38 = vpop.f32.mrb[19].mxu1  ;;  %1224 = vrot.lane.b32.xlu1 %v668_v35, %s1954_s28 }
 0x59f   : > { %v771_v40 = vpop.f32.mrb[20].mxu1 }
 0x5a0   : > { %v778_v41 = vmul.f32 %v1765_v39, %v771_v40  ;;  %v1577_v42 = vpop.f32.mrb[21].mxu1 }
 0x5a1   : > { %v774_v43 = vpop.f32.mrb[22].mxu1 }
 0x5a2   : > { %v1578_v44 = vpop.f32.mrb[23].mxu1  ;;  %1228 = vrot.lane.b32.xlu1 %v778_v41, %s1953_s26  ;;  %s1959_s26 = smov [#allocation8]  }
 0x5a3   : > { %s1866_s28 = sshll.u32 %s1959_s26, 4  ;;  %s1867_s28 = int_to_ptr.vmem [resolvable:$false] %s1866_s28 }
 0x5a4   : > { %s1868_s27 = scalar_lea.vmem %s1867_s28, 256 }
 0x5a7   : > { %v881_v46 = vpop.f32.mrb[24].mxu1 }
 0x5a8   : > { %v888_v47 = vmul.f32 %v1767_v45, %v881_v46  ;;  %v1589_v48 = vpop.f32.mrb[25].mxu1 }
 0x5a9   : > { %v884_v49 = vpop.f32.mrb[26].mxu1 }
 0x5aa   : > { %v1590_v50 = vpop.f32.mrb[27].mxu1  ;;  %1232 = vrot.lane.b32.xlu1 %v888_v47, %s1951_s13  ;;  %s2365_s13 = scalar_lea.hbm %s2414_s4, %s1491_s30 }
 0x5bb   : > { %v991_v55 = vpop.f32.mrb[28].mxu1 }
 0x5bc   : > { %v998_v57 = vmul.f32 %v1769_v20, %v991_v55  ;;  %v1601_v58 = vpop.f32.mrb[29].mxu1 }
 0x5bd   : > { %v994_v59 = vpop.f32.mrb[30].mxu1 }
 0x5be   : > { %v1602_v60 = vpop.f32.mrb[31].mxu1  ;;  %1236 = vrot.lane.b32.xlu0 %v998_v57, %s1949_s7 }
 0x5c4   : > { %v1101_v1 = vpop.f32.mrb[32].mxu1 }
 0x5c5   : > { %v1108_v2 = vmul.f32 %v1771_v0, %v1101_v1  ;;  %v1613_v3 = vpop.f32.mrb[33].mxu1 }
 0x5c6   : > { %v1104_v4 = vpop.f32.mrb[34].mxu1 }
 0x5c7   : > { %v1614_v5 = vpop.f32.mrb[35].mxu1  ;;  %1240 = vrot.lane.b32.xlu1 %v1108_v2, %s1947_s6  ;;  %s241_s6 = scalar_lea.vmem [#allocation8], %s1458_s10 }
 0x5c8   : > { %s1358_s25 = sshll.u32 %s241_s6, 4  ;;  %s2367_s25 = int_to_ptr.vmem [resolvable:$true] %s1358_s25 }
 0x5c9   : > { %s1862_s24 = scalar_lea.vmem %s2367_s25, 128  ;;  %p1869_p5 = scmp.lt.s32.totalorder %s2367_s25, %s1867_s28 }
 0x5ca   : > { %p1863_p8 = scmp.ne.s32.totalorder %s2367_s25, %s1862_s24  ;;  %p1870_p9 = scmp.lt.s32.totalorder %s1868_s27, %s1862_s24 }
 0x5cc   : > { %v1211_v7 = vpop.f32.mrb[36].mxu1  ;;  %p1864_p1 = pnand %p1863_p8, %p2428_p0  ;;  %p1871_p12 = por %p1870_p9, %p1869_p5 }
 0x5cd   : > { %v1218_v8 = vmul.f32 %v1773_v6, %v1211_v7  ;;  %v1625_v9 = vpop.f32.mrb[37].mxu1 }
 0x5ce   : > { %v1214_v11 = vpop.f32.mrb[38].mxu1  ;;  %p1865_p3 = pneg %p1864_p1 }
 0x5cf   : > { %v1626_v13 = vpop.f32.mrb[39].mxu1  ;;  %1244 = vrot.lane.b32.xlu0 %v1218_v8, %s1944_s21 }
 0x5d0   : > { %p1872_p2 = pnand %p1871_p12, %p1865_p3 }
 0x604   : > { %v1221_v17 = vpop.permute.xlu0 %1220 }
 0x605   : > { %v1247_v21 = vsel %vm342_vm2, %v447_v18, %v1221_v17 }
 0x60c   : > { %v1225_v14 = vpop.permute.xlu1 %1224 }
 0x60d   : > { %v1249_v22 = vsel %vm1248_vm4, %v1247_v21, %v1225_v14 }
 0x614   : > { %v1229_v15 = vpop.permute.xlu1 %1228 }
 0x615   : > { %v1251_v24 = vsel %vm1250_vm5, %v1249_v22, %v1229_v15 }
 0x61c   : > { %v1233_v19 = vpop.permute.xlu1 %1232 }
 0x61d   : > { %v1253_v26 = vsel %vm1252_vm6, %v1251_v24, %v1233_v19 }
 0x630   : > { %v1237_v23 = vpop.permute.xlu0 %1236 }
 0x631   : > { %v1255_v27 = vsel %vm1254_vm7, %v1253_v26, %v1237_v23 }
 0x639   : > { %v1241_v25 = vpop.permute.xlu1 %1240 }
 0x63a   : > { %v1257_v28 = vsel %vm1256_vm8, %v1255_v27, %v1241_v25 }
 0x641   : > { %v1245_v29 = vpop.permute.xlu0 %1244 }
 0x642   : > { %v1259_v16 = vsel %vm1258_vm9, %v1257_v28, %v1245_v29 }
 0x643   : > { %v1260_v30 = vpack.c.bf16 %v1259_v16, %v1259_v16 }
 0x645   : > { %1636 = vmatmul.mubr.msk.bf16.vlgmr.msra.gmra.mrb[28].mxu0 %vm292_vm0, %v1260_v30 }
 0x718   : > { %v1337_v32 = vpop.f32.mrb[28].mxu0 }
 0x719   : > { %v1338_v33 = vadd.f32 %v1484_v31, %v1337_v32  ;;  %v1637_v62 = vpop.f32.mrb[29].mxu0 }
 0x71a   : > { %v1340_v34 = vpop.f32.mrb[30].mxu0 }
 0x71b   : > { %v1638_v35 = vpop.f32.mrb[31].mxu0  ;;  %1343 = vst.msk [vmem:[%s241_s6] sm:$0xff] %vm292_vm0, %v1338_v33 }
 0x71c   : > { %1875 = shalt.err (!%p1872_p2)
}
 0x71d   : > { %s1876_s5 = scalar_lea.hbm %s2365_s13, 128  ;;  %s1880_s9 = scalar_lea.hbm %s2414_s4, 256 }
 0x71e   : > { %p1877_p13 = scmp.ne.s32.totalorder %s2365_s13, %s1876_s5  ;;  %p1881_p4 = scmp.lt.u32.totalorder %s2365_s13, %s2414_s4 }
 0x71f   : > { %p1882_p7 = scmp.lt.u32.totalorder %s1880_s9, %s1876_s5  ;;  %p1884_p8 = scmp.lt.u32.totalorder %s1876_s5, %s2365_s13 }
 0x720   : > { %p1878_p6 = pnand %p1877_p13, %p2428_p0 }
 0x721   : > { %p1883_p11 = por %p1882_p7, %p1881_p4 }
 0x722   : > { %p1879_p10 = pneg %p1878_p6 }
 0x723   : > { %p1885_p1 = por %p1884_p8, %p1883_p11 }
 0x725   : > { %p1886_p3 = pnand %p1885_p1, %p1879_p10 }
 0x727   : > { %1889 = shalt.err (!%p1886_p3)
}
 0x728   : > { %1649 = dma.vmem_to_hbm [thread:$0]  (%p2428_p0), %s2367_s25, 128, %s2365_s13, %s1345_s19  }
 0x729 PF: > { %s1370_s23 = sand.u32 1, %s1920_s15   ;;  %p2429_p5 = scmp.ne.s32.totalorder %s2419_s22, 0 }
 0x72a   : > { %p2430_p9 = scmp.ge.s32.totalorder %s1932_s18, 2  ;;  %s1371_s30 = scalar_lea.sflag [#allocation4], %s1370_s23 }
 0x72c   : > { %p1663_p12 = pnand %p2430_p9, %p2429_p5 }
 0x72e   : > { %1915 = dma.done.wait (!%p1663_p12), %s1371_s30, 128  }
 0x72f   : > { %1917 = vsyncadd (!%p1663_p12), %s1371_s30, 4294967168  ;;  %p18_p2 = scmp.ge.s32.totalorder %s2095_s11, 4   ;;  %s2431_s15 = smov %s1924_s16 }
 0x730   : > { %s2432_s16 = smov %s1928_s17  ;;  %s2433_s17 = smov %s2104_s14 }
 0x731   : > { %s2434_s18 = smov %s2095_s11  ;;  %20 = sbr.rel (!%p18_p2) target bundleno = 6 (0x6), region = 89 }
 0x738   :  { %1376 = vsyncpa [#allocation3], 1 }
 0x739   :  { %1378 = vsyncpa [#allocation3 + $0x1], 1 }
 0x73a   :  { %1379 = vsyncpa [#allocation6], 1 }
 0x73b   :  { %1380 = vsyncpa [#allocation4], 1 }
 0x73c   :  { %1382 = vsyncpa [#allocation4 + $0x1], 1 }

</bundles_post_ra>
